<compile_context>
chip_gen: v6e
topology: v6e:2x2x1
jax: 0.10.0
libtpu: 0.0.40
codegen_flags: <defaults>
</compile_context>

<pallas_src>
import functools

import jax
import jax.numpy as jnp
from jax.experimental import pallas as pl
from jax.experimental.pallas import tpu as pltpu

OUT_W = 128  # lane-dense packed output width (unmasked vector stores)


# --------------------------------------------------------------------------
# Kernel: one batch tile per grid step.
# --------------------------------------------------------------------------
def actor_critic_kernel(state_ref, action_ref,
                        w1_ref, b1_ref, w2_ref, b2_ref, w3_ref, b3_ref,
                        out_ref, *, action_dim):
    x = state_ref[...]                                            # (TB, S) f32

    # Fused actor+critic MLP: 3 matmuls, all 128 lanes wide.
    h = jnp.tanh(jnp.dot(x, w1_ref[...],
                         preferred_element_type=jnp.float32) + b1_ref[...])
    h = jnp.tanh(jnp.dot(h, w2_ref[...],
                         preferred_element_type=jnp.float32) + b2_ref[...])
    slab = jnp.dot(h, w3_ref[...],
                   preferred_element_type=jnp.float32) + b3_ref[...]  # (TB, 128)

    col = jax.lax.broadcasted_iota(jnp.int32, slab.shape, 1)      # (TB, 128)

    # Softmax over the first `action_dim` lanes only; padded lanes masked with
    # a large finite negative (avoids 0 * -inf = NaN in the gathers below).
    neg_big = jnp.float32(-1e30)
    logits = jnp.where(col < action_dim, slab, neg_big)
    m = jnp.max(logits, axis=-1, keepdims=True)
    e = jnp.exp(logits - m)
    z = jnp.sum(e, axis=-1, keepdims=True)
    probs = e * pl.reciprocal(z, approx=True)                     # EUP, ~free
    log_z = jnp.log(z)                                            # exact path
    log_probs = (logits - m) - log_z

    # Categorical.log_prob(action): gather via one-hot compare (no scalar
    # gather on TPU).
    a = action_ref[...]                                           # (TB, 1) i32
    onehot = (col == a).astype(jnp.float32)
    logp = jnp.sum(onehot * log_probs, axis=-1, keepdims=True)    # (TB, 1)

    # Categorical.entropy(): -sum p log p (padded lanes contribute exactly 0).
    ent = -jnp.sum(probs * log_probs, axis=-1, keepdims=True)     # (TB, 1)

    # Critic value sits in lane `action_dim` of the fused layer-3 slab.
    value = jnp.sum(jnp.where(col == action_dim, slab, 0.0),
                    axis=-1, keepdims=True)                       # (TB, 1)

    # Single lane-dense packed output: lane 0 = logp, 1 = value, 2 = entropy.
    out_ref[...] = jnp.where(col == 0, logp,
                             jnp.where(col == 1, value,
                                       jnp.where(col == 2, ent, 0.0)))


# --------------------------------------------------------------------------
# Host-side helpers
# --------------------------------------------------------------------------
def _round_up(x, m):
    return ((x + m - 1) // m) * m


def pack_params(params, action_dim):
    """One-time host-side repack of the 6 Linear layers into 3 fused layers."""
    (wa1, ba1, wa2, ba2, wa3, ba3,
     wv1, bv1, wv2, bv2, wv3, bv3) = params
    H = wa1.shape[1]
    A = action_dim

    w1 = jnp.concatenate([wa1, wv1], axis=1)                      # (S, 2H)
    b1 = jnp.concatenate([ba1, bv1], axis=1)                      # (1, 2H)

    zeros = jnp.zeros((H, H), jnp.float32)
    w2 = jnp.block([[wa2, zeros], [zeros, wv2]])                  # (2H, 2H)
    b2 = jnp.concatenate([ba2, bv2], axis=1)                      # (1, 2H)

    w3 = jnp.zeros((2 * H, OUT_W), jnp.float32)
    w3 = w3.at[:H, :A].set(wa3)                                   # actor logits
    w3 = w3.at[H:, A].set(wv3[:, 0])                              # critic value
    b3 = jnp.zeros((1, OUT_W), jnp.float32)
    b3 = b3.at[0, :A].set(ba3[0])
    b3 = b3.at[0, A].set(bv3[0, 0])
    return (w1, b1, w2, b2, w3, b3)


def actor_critic_evaluate(state, action, packed, action_dim, *, tile_b=256):
    """Pallas equivalent of ActorCritic.evaluate(state, action).

    Returns (action_logprobs (B,), state_value (B,), dist_entropy (B,)).
    """
    B, S = state.shape
    w1, b1, w2, b2, w3, b3 = packed
    H2 = w1.shape[1]

    tile_b = min(tile_b, _round_up(B, 8))       # sublane-aligned batch tile
    Bp = _round_up(B, tile_b)
    if Bp != B:
        state = jnp.pad(state, ((0, Bp - B), (0, 0)))
        action = jnp.pad(action, ((0, Bp - B),))
    action_2d = action.astype(jnp.int32).reshape(Bp, 1)
    # TODO(synk): no in-kernel validation of the action range; PyTorch
    # Categorical raises on out-of-range actions, here they hit a masked lane.

    grid = (Bp // tile_b,)
    kernel = functools.partial(actor_critic_kernel, action_dim=action_dim)

    out = pl.pallas_call(
        kernel,
        out_shape=jax.ShapeDtypeStruct((Bp, OUT_W), jnp.float32),
        grid_spec=pltpu.PrefetchScalarGridSpec(
            num_scalar_prefetch=0,
            grid=grid,
            in_specs=[
                pl.BlockSpec((tile_b, S), lambda i: (i, 0)),      # state tile
                pl.BlockSpec((tile_b, 1), lambda i: (i, 0)),      # action tile
                pl.BlockSpec((S, H2), lambda i: (0, 0)),          # fused W1
                pl.BlockSpec((1, H2), lambda i: (0, 0)),          # fused b1
                pl.BlockSpec((H2, H2), lambda i: (0, 0)),         # fused W2
                pl.BlockSpec((1, H2), lambda i: (0, 0)),          # fused b2
                pl.BlockSpec((H2, OUT_W), lambda i: (0, 0)),      # fused W3
                pl.BlockSpec((1, OUT_W), lambda i: (0, 0)),       # fused b3
            ],
            out_specs=pl.BlockSpec((tile_b, OUT_W), lambda i: (i, 0)),
        ),
        compiler_params=pltpu.CompilerParams(
            dimension_semantics=("parallel",)),
    )(state, action_2d, w1, b1, w2, b2, w3, b3)

    logp = out[:B, 0]
    value = out[:B, 1]
    ent = out[:B, 2]
    return logp, value, ent


def init_params(key, state_dim, action_dim, n_latent_var):
    """nn.Linear-style init (uniform +-1/sqrt(fan_in)); weights stored as
    (in_features, out_features), biases as (1, out_features)."""
    def linear(k, fan_in, fan_out):
        kw, kb = jax.random.split(k)
        bound = 1.0 / jnp.sqrt(jnp.asarray(fan_in, jnp.float32))
        w = jax.random.uniform(kw, (fan_in, fan_out), jnp.float32, -bound, bound)
        b = jax.random.uniform(kb, (1, fan_out), jnp.float32, -bound, bound)
        return w, b

    keys = jax.random.split(key, 6)
    wa1, ba1 = linear(keys[0], state_dim, n_latent_var)
    wa2, ba2 = linear(keys[1], n_latent_var, n_latent_var)
    wa3, ba3 = linear(keys[2], n_latent_var, action_dim)
    wv1, bv1 = linear(keys[3], state_dim, n_latent_var)
    wv2, bv2 = linear(keys[4], n_latent_var, n_latent_var)
    wv3, bv3 = linear(keys[5], n_latent_var, 1)
    return (wa1, ba1, wa2, ba2, wa3, ba3,
            wv1, bv1, wv2, bv2, wv3, bv3)


def reference_evaluate(state, action, params):
    """Pure-JAX reference (mirrors the PyTorch ActorCritic.evaluate)."""
    (wa1, ba1, wa2, ba2, wa3, ba3,
     wv1, bv1, wv2, bv2, wv3, bv3) = params
    h = jnp.tanh(state @ wa1 + ba1)
    h = jnp.tanh(h @ wa2 + ba2)
    logits = h @ wa3 + ba3
    logp_all = jax.nn.log_softmax(logits, axis=-1)
    probs = jax.nn.softmax(logits, axis=-1)
    logp = jnp.take_along_axis(logp_all, action[:, None].astype(jnp.int32),
                               axis=-1)[:, 0]
    ent = -jnp.sum(probs * logp_all, axis=-1)
    hv = jnp.tanh(state @ wv1 + bv1)
    hv = jnp.tanh(hv @ wv2 + bv2)
    value = (hv @ wv3 + bv3)[:, 0]
    return logp, value, ent


if __name__ == "__main__":
    # LunarLander-v2: state_dim = 8, action_dim = 4; n_latent_var = 64.
    STATE_DIM, ACTION_DIM, N_LATENT = 8, 4, 64
    BATCH = 512          # PPO evaluate runs over a rollout batch
    TILE_B = 256         # 2 grid steps -> exercises the batch pipeline

    key = jax.random.PRNGKey(0)
    k_params, k_state, k_act = jax.random.split(key, 3)

    params = init_params(k_params, STATE_DIM, ACTION_DIM, N_LATENT)
    packed = pack_params(params, ACTION_DIM)
    state = jax.random.normal(k_state, (BATCH, STATE_DIM), jnp.float32)
    action = jax.random.randint(k_act, (BATCH,), 0, ACTION_DIM, jnp.int32)

    logp, value, ent = actor_critic_evaluate(state, action, packed,
                                             ACTION_DIM, tile_b=TILE_B)
    jax.block_until_ready((logp, value, ent))

    # Cross-check against the pure-JAX reference.
    logp_r, value_r, ent_r = reference_evaluate(state, action, params)
    assert jnp.allclose(logp, logp_r, atol=1e-4, rtol=1e-4), "logprob mismatch"
    assert jnp.allclose(value, value_r, atol=1e-4, rtol=1e-4), "value mismatch"
    # Entropy uses the approx (EUP) reciprocal -> slightly looser tolerance.
    assert jnp.allclose(ent, ent_r, atol=2e-3, rtol=2e-3), "entropy mismatch"

    print("KERNEL_OK")
</pallas_src>

<mosaic_0001>
module attributes {stable_mosaic.version = 11 : i64} {
  func.func @actor_critic_kernel(%arg0: i32, %arg1: memref<256x8xf32, #tpu.memory_space<vmem>>, %arg2: memref<256x1xi32, #tpu.memory_space<vmem>>, %arg3: memref<8x128xf32, #tpu.memory_space<vmem>>, %arg4: memref<1x128xf32, #tpu.memory_space<vmem>>, %arg5: memref<128x128xf32, #tpu.memory_space<vmem>>, %arg6: memref<1x128xf32, #tpu.memory_space<vmem>>, %arg7: memref<128x128xf32, #tpu.memory_space<vmem>>, %arg8: memref<1x128xf32, #tpu.memory_space<vmem>>, %arg9: memref<256x128xf32, #tpu.memory_space<vmem>>) attributes {dimension_semantics = [#tpu.dimension_semantics<parallel>], iteration_bounds = array<i64: 2>, scalar_prefetch = 0 : i64, scratch_operands = 0 : i64, tpu.core_type = #tpu.core_type<tc>, window_params = [{transform_indices = @transform_0, window_bounds = array<i64: 256, 8>}, {transform_indices = @transform_1, window_bounds = array<i64: 256, 1>}, {pipeline_mode = #tpu.pipeline_mode<synchronous>, transform_indices = @transform_2, window_bounds = array<i64: 8, 128>}, {pipeline_mode = #tpu.pipeline_mode<synchronous>, transform_indices = @transform_3, window_bounds = array<i64: 1, 128>}, {pipeline_mode = #tpu.pipeline_mode<synchronous>, transform_indices = @transform_4, window_bounds = array<i64: 128, 128>}, {pipeline_mode = #tpu.pipeline_mode<synchronous>, transform_indices = @transform_5, window_bounds = array<i64: 1, 128>}, {pipeline_mode = #tpu.pipeline_mode<synchronous>, transform_indices = @transform_6, window_bounds = array<i64: 128, 128>}, {pipeline_mode = #tpu.pipeline_mode<synchronous>, transform_indices = @transform_7, window_bounds = array<i64: 1, 128>}, {transform_indices = @transform_8, window_bounds = array<i64: 256, 128>}]} {
    %c0 = arith.constant 0 : index
    %c0_0 = arith.constant 0 : index
    %0 = vector.load %arg1[%c0, %c0_0] : memref<256x8xf32, #tpu.memory_space<vmem>>, vector<256x8xf32>
    %c0_1 = arith.constant 0 : index
    %c0_2 = arith.constant 0 : index
    %1 = vector.load %arg3[%c0_1, %c0_2] : memref<8x128xf32, #tpu.memory_space<vmem>>, vector<8x128xf32>
    %cst = arith.constant dense<0.000000e+00> : vector<256x128xf32>
    %2 = tpu.matmul %0, %1, %cst {dimension_numbers = #tpu.dot_dimension_numbers<[1], [0], [0], [1], [0, 0, 1, 1], [], []>} : vector<256x8xf32>, vector<8x128xf32>, vector<256x128xf32> -> vector<256x128xf32>
    %c0_3 = arith.constant 0 : index
    %c0_4 = arith.constant 0 : index
    %3 = vector.load %arg4[%c0_3, %c0_4] : memref<1x128xf32, #tpu.memory_space<vmem>>, vector<1x128xf32>
    %4 = vector.broadcast %3 : vector<1x128xf32> to vector<256x128xf32>
    %5 = arith.addf %2, %4 : vector<256x128xf32>
    %6 = math.tanh %5 : vector<256x128xf32>
    %c0_5 = arith.constant 0 : index
    %c0_6 = arith.constant 0 : index
    %7 = vector.load %arg5[%c0_5, %c0_6] : memref<128x128xf32, #tpu.memory_space<vmem>>, vector<128x128xf32>
    %cst_7 = arith.constant dense<0.000000e+00> : vector<256x128xf32>
    %8 = tpu.matmul %6, %7, %cst_7 {dimension_numbers = #tpu.dot_dimension_numbers<[1], [0], [0], [1], [0, 0, 1, 1], [], []>} : vector<256x128xf32>, vector<128x128xf32>, vector<256x128xf32> -> vector<256x128xf32>
    %c0_8 = arith.constant 0 : index
    %c0_9 = arith.constant 0 : index
    %9 = vector.load %arg6[%c0_8, %c0_9] : memref<1x128xf32, #tpu.memory_space<vmem>>, vector<1x128xf32>
    %10 = vector.broadcast %9 : vector<1x128xf32> to vector<256x128xf32>
    %11 = arith.addf %8, %10 : vector<256x128xf32>
    %12 = math.tanh %11 : vector<256x128xf32>
    %c0_10 = arith.constant 0 : index
    %c0_11 = arith.constant 0 : index
    %13 = vector.load %arg7[%c0_10, %c0_11] : memref<128x128xf32, #tpu.memory_space<vmem>>, vector<128x128xf32>
    %cst_12 = arith.constant dense<0.000000e+00> : vector<256x128xf32>
    %14 = tpu.matmul %12, %13, %cst_12 {dimension_numbers = #tpu.dot_dimension_numbers<[1], [0], [0], [1], [0, 0, 1, 1], [], []>} : vector<256x128xf32>, vector<128x128xf32>, vector<256x128xf32> -> vector<256x128xf32>
    %c0_13 = arith.constant 0 : index
    %c0_14 = arith.constant 0 : index
    %15 = vector.load %arg8[%c0_13, %c0_14] : memref<1x128xf32, #tpu.memory_space<vmem>>, vector<1x128xf32>
    %16 = vector.broadcast %15 : vector<1x128xf32> to vector<256x128xf32>
    %17 = arith.addf %14, %16 : vector<256x128xf32>
    %18 = tpu.iota {dimensions = array<i32: 1>} : vector<256x128xi32>
    %c4_i32 = arith.constant 4 : i32
    %19 = vector.broadcast %c4_i32 : i32 to vector<256x128xi32>
    %20 = arith.cmpi slt, %18, %19 : vector<256x128xi32>
    %cst_15 = arith.constant -1.000000e+30 : f32
    %21 = vector.broadcast %cst_15 : f32 to vector<256x128xf32>
    %22 = arith.select %20, %17, %21 : vector<256x128xi1>, vector<256x128xf32>
    %cst_16 = arith.constant dense<0xFF800000> : vector<256xf32>
    %23 = vector.multi_reduction <maximumf>, %22, %cst_16 [1] : vector<256x128xf32> to vector<256xf32>
    %24 = vector.shape_cast %23 : vector<256xf32> to vector<256x1xf32>
    %25 = vector.broadcast %24 : vector<256x1xf32> to vector<256x128xf32>
    %26 = arith.subf %22, %25 : vector<256x128xf32>
    %27 = math.exp %26 : vector<256x128xf32>
    %cst_17 = arith.constant dense<0.000000e+00> : vector<256xf32>
    %28 = vector.multi_reduction <add>, %27, %cst_17 [1] : vector<256x128xf32> to vector<256xf32>
    %29 = vector.shape_cast %28 : vector<256xf32> to vector<256x1xf32>
    %30 = tpu.reciprocal %29 {approx = true} : vector<256x1xf32> -> vector<256x1xf32>
    %31 = vector.broadcast %30 : vector<256x1xf32> to vector<256x128xf32>
    %32 = arith.mulf %27, %31 : vector<256x128xf32>
    %33 = math.log %29 : vector<256x1xf32>
    %34 = vector.broadcast %24 : vector<256x1xf32> to vector<256x128xf32>
    %35 = arith.subf %22, %34 : vector<256x128xf32>
    %36 = vector.broadcast %33 : vector<256x1xf32> to vector<256x128xf32>
    %37 = arith.subf %35, %36 : vector<256x128xf32>
    %c0_18 = arith.constant 0 : index
    %c0_19 = arith.constant 0 : index
    %38 = vector.load %arg2[%c0_18, %c0_19] : memref<256x1xi32, #tpu.memory_space<vmem>>, vector<256x1xi32>
    %39 = vector.broadcast %38 : vector<256x1xi32> to vector<256x128xi32>
    %40 = arith.cmpi eq, %18, %39 : vector<256x128xi32>
    %41 = arith.extui %40 : vector<256x128xi1> to vector<256x128xi32>
    %42 = arith.sitofp %41 : vector<256x128xi32> to vector<256x128xf32>
    %43 = arith.mulf %42, %37 : vector<256x128xf32>
    %cst_20 = arith.constant dense<0.000000e+00> : vector<256xf32>
    %44 = vector.multi_reduction <add>, %43, %cst_20 [1] : vector<256x128xf32> to vector<256xf32>
    %45 = vector.shape_cast %44 : vector<256xf32> to vector<256x1xf32>
    %46 = arith.mulf %32, %37 : vector<256x128xf32>
    %cst_21 = arith.constant dense<0.000000e+00> : vector<256xf32>
    %47 = vector.multi_reduction <add>, %46, %cst_21 [1] : vector<256x128xf32> to vector<256xf32>
    %48 = vector.shape_cast %47 : vector<256xf32> to vector<256x1xf32>
    %cst_22 = arith.constant 0.000000e+00 : f32
    %49 = vector.broadcast %cst_22 : f32 to vector<256x1xf32>
    %50 = arith.subf %49, %48 : vector<256x1xf32>
    %c4_i32_23 = arith.constant 4 : i32
    %51 = vector.broadcast %c4_i32_23 : i32 to vector<256x128xi32>
    %52 = arith.cmpi eq, %18, %51 : vector<256x128xi32>
    %cst_24 = arith.constant 0.000000e+00 : f32
    %53 = vector.broadcast %cst_24 : f32 to vector<256x128xf32>
    %54 = arith.select %52, %17, %53 : vector<256x128xi1>, vector<256x128xf32>
    %cst_25 = arith.constant dense<0.000000e+00> : vector<256xf32>
    %55 = vector.multi_reduction <add>, %54, %cst_25 [1] : vector<256x128xf32> to vector<256xf32>
    %56 = vector.shape_cast %55 : vector<256xf32> to vector<256x1xf32>
    %c0_i32 = arith.constant 0 : i32
    %57 = vector.broadcast %c0_i32 : i32 to vector<256x128xi32>
    %58 = arith.cmpi eq, %18, %57 : vector<256x128xi32>
    %c1_i32 = arith.constant 1 : i32
    %59 = vector.broadcast %c1_i32 : i32 to vector<256x128xi32>
    %60 = arith.cmpi eq, %18, %59 : vector<256x128xi32>
    %c2_i32 = arith.constant 2 : i32
    %61 = vector.broadcast %c2_i32 : i32 to vector<256x128xi32>
    %62 = arith.cmpi eq, %18, %61 : vector<256x128xi32>
    %cst_26 = arith.constant 0.000000e+00 : f32
    %63 = vector.shape_cast %50 : vector<256x1xf32> to vector<256x1xf32>
    %64 = vector.broadcast %63 : vector<256x1xf32> to vector<256x128xf32>
    %65 = vector.broadcast %cst_26 : f32 to vector<256x128xf32>
    %66 = arith.select %62, %64, %65 : vector<256x128xi1>, vector<256x128xf32>
    %67 = vector.shape_cast %56 : vector<256x1xf32> to vector<256x1xf32>
    %68 = vector.broadcast %67 : vector<256x1xf32> to vector<256x128xf32>
    %69 = arith.select %60, %68, %66 : vector<256x128xi1>, vector<256x128xf32>
    %70 = vector.shape_cast %45 : vector<256x1xf32> to vector<256x1xf32>
    %71 = vector.broadcast %70 : vector<256x1xf32> to vector<256x128xf32>
    %72 = arith.select %58, %71, %69 : vector<256x128xi1>, vector<256x128xf32>
    %c0_27 = arith.constant 0 : index
    %c0_28 = arith.constant 0 : index
    %73 = vector.load %arg9[%c0_27, %c0_28] : memref<256x128xf32, #tpu.memory_space<vmem>>, vector<256x128xf32>
    tpu.vector_store %arg9[%c0_27, %c0_28], %72 {strides = array<i32>} : memref<256x128xf32, #tpu.memory_space<vmem>>, vector<256x128xf32>,
    return
  }
  func.func @transform_0(%arg0: i32) -> (i32, i32) {
    %c0_i32 = arith.constant 0 : i32
    %c0_i32_0 = arith.constant 0 : i32
    return %arg0, %c0_i32 : i32, i32
  }
  func.func @transform_1(%arg0: i32) -> (i32, i32) {
    %c0_i32 = arith.constant 0 : i32
    %c0_i32_0 = arith.constant 0 : i32
    return %arg0, %c0_i32 : i32, i32
  }
  func.func @transform_2(%arg0: i32) -> (i32, i32) {
    %c0_i32 = arith.constant 0 : i32
    %c0_i32_0 = arith.constant 0 : i32
    %c0_i32_1 = arith.constant 0 : i32
    return %c0_i32, %c0_i32_0 : i32, i32
  }
  func.func @transform_3(%arg0: i32) -> (i32, i32) {
    %c0_i32 = arith.constant 0 : i32
    %c0_i32_0 = arith.constant 0 : i32
    %c0_i32_1 = arith.constant 0 : i32
    return %c0_i32, %c0_i32_0 : i32, i32
  }
  func.func @transform_4(%arg0: i32) -> (i32, i32) {
    %c0_i32 = arith.constant 0 : i32
    %c0_i32_0 = arith.constant 0 : i32
    %c0_i32_1 = arith.constant 0 : i32
    return %c0_i32, %c0_i32_0 : i32, i32
  }
  func.func @transform_5(%arg0: i32) -> (i32, i32) {
    %c0_i32 = arith.constant 0 : i32
    %c0_i32_0 = arith.constant 0 : i32
    %c0_i32_1 = arith.constant 0 : i32
    return %c0_i32, %c0_i32_0 : i32, i32
  }
  func.func @transform_6(%arg0: i32) -> (i32, i32) {
    %c0_i32 = arith.constant 0 : i32
    %c0_i32_0 = arith.constant 0 : i32
    %c0_i32_1 = arith.constant 0 : i32
    return %c0_i32, %c0_i32_0 : i32, i32
  }
  func.func @transform_7(%arg0: i32) -> (i32, i32) {
    %c0_i32 = arith.constant 0 : i32
    %c0_i32_0 = arith.constant 0 : i32
    %c0_i32_1 = arith.constant 0 : i32
    return %c0_i32, %c0_i32_0 : i32, i32
  }
  func.func @transform_8(%arg0: i32) -> (i32, i32) {
    %c0_i32 = arith.constant 0 : i32
    %c0_i32_0 = arith.constant 0 : i32
    return %arg0, %c0_i32 : i32, i32
  }
}

</mosaic_0001>

<bundles_post_ra>
// kernel: tpu_custom_call.1
= control target key start
LH: loop header
LB: loop body
LE: loop exit
PB: predicated region body
PF: predicated region fallthrough
CT: control target
= control target key end

     0   :  { %13 = vsyncpa [#allocation3], 0  ;;  %s4836_s0 = inlined_call_operand.vmem [shape: f32[512,8], index: 0, kind: input, shape index: {}]   ;;  %s4837_s1 = inlined_call_operand.vmem [shape: s32[512,1], index: 1, kind: input, shape index: {}]   ;;  %s4838_s2 = inlined_call_operand.vmem [shape: f32[8,128], index: 2, kind: input, shape index: {}]   ;;  %s4839_s3 = inlined_call_operand.vmem [shape: f32[1,128], index: 3, kind: input, shape index: {}]   ;;  %s4840_s4 = inlined_call_operand.vmem [shape: f32[128,128], index: 4, kind: input, shape index: {}]   ;;  %s4841_s5 = inlined_call_operand.vmem [shape: f32[1,128], index: 5, kind: input, shape index: {}]   ;;  %s4842_s6 = inlined_call_operand.vmem [shape: f32[128,128], index: 6, kind: input, shape index: {}]   ;;  %s4843_s7 = inlined_call_operand.vmem [shape: f32[1,128], index: 7, kind: input, shape index: {}]   ;;  %s4844_s8 = inlined_call_operand.hbm [shape: f32[512,128], index: 8, kind: output, shape index: {}]  }
   0x1   :  { %15 = vsyncpa [#allocation3 + $0x1], 0  ;;  %s3334_s27 = smov 0   ;;  %s3336_s28 = smov 0  }
   0x2   :  { %s3338_s29 = smov 0   ;;  %s3340_s30 = smov 0  }
   0x3 LB: > { %s3355_s9 = sadd.s32 4294967295, %s3282_s30   ;;  %s2434_s10 = sadd.s32 4294967294, %s3282_s30   ;;  %s3282_s30 = sphi %s3340_s30, %s5046_s30   ;;  %s3278_s29 = sphi %s3338_s29, %s5045_s29   ;;  %s3274_s28 = sphi %s3336_s28, %s5044_s28   ;;  %s3270_s27 = sphi %s3334_s27, %s5043_s27  }
   0x4   : > { %s3359_s11 = sadd.s32 1, %s3282_s30   ;;  %s206_s12 = sadd.s32 1, %s3278_s29 }
   0x5   : > { %s203_s13 = ssub.s32 %s3282_s30, %s3359_s11  ;;  %p216_p0 = scmp.ne.s32.totalorder %s3278_s29, %s3274_s28 }
   0x6   : > { %p204_p1 = scmp.eq.s32.totalorder %s203_s13, 0  ;;  %p217_p2 = scmp.eq.s32.totalorder %s3355_s9, 1 }
   0x7   : > { %p222_p3 = scmp.ne.s32.totalorder %s3274_s28, %s3270_s27  ;;  %p223_p4 = scmp.eq.s32.totalorder %s2434_s10, 1 }
   0x8   : > { %s3370_s14 = scalar_select %p204_p1, %s3278_s29, %s206_s12  }
   0x9   : > { %p3372_p5 = por %p217_p2, %p216_p0  ;;  %p3376_p6 = por %p223_p4, %p222_p3 }
   0xa   : > { %p2437_p7 = scmp.ge.s32.totalorder %s3282_s30, 1  ;;  %p277_p8 = scmp.lt.s32.totalorder %s3282_s30, 3 }
   0xc   : > { %p278_p9 = pnand %p2437_p7, %p277_p8 }
   0xe   : > { %281 = sbr.rel (%p278_p9) target bundleno = 1247 (0x4df), region = 52 }
  0x13   : > { %v361_v0 = vld [vmem:[%s4838_s2] sm:$0xff]  ;;  %s2439_s19 = sshll.u32 %s3355_s9, 5  ;;  %v738_v1 = vld [vmem:[%s4840_s4 + $0x78] sm:$0xff]  ;;  %vm369_vm0 = vcmask 64512   ;;  %v737_v10 = vld [vmem:[%s4840_s4 + $0x70] sm:$0xff]  ;;  %s313_s17 = sand.u32 1, %s3274_s28  }
  0x14   : > { %2645 = vmatprep.subr.mxu0 %v361_v0  ;;  %p317_p10 = scmp.lt.s32.totalorder %s2439_s19, 63  ;;  %2855 = vmatprep.subr.mxu1 %v361_v0  ;;  %v736_v15 = vld [vmem:[%s4840_s4 + $0x68] sm:$0xff]  ;;  %v735_v17 = vld [vmem:[%s4840_s4 + $0x60] sm:$0xff]  ;;  %v734_v21 = vld [vmem:[%s4840_s4 + $0x58] sm:$0xff]  ;;  %s2438_s18 = sshll.u32 %s313_s17, 8 }
  0x15   : > { %2646 = vmatpush3.msra.mxu0 %v361_v0  ;;  %2856 = vmatpush3.msra.mxu1 %v361_v0  ;;  %v733_v26 = vld [vmem:[%s4840_s4 + $0x50] sm:$0xff]  ;;  %v732_v28 = vld [vmem:[%s4840_s4 + $0x48] sm:$0xff]  ;;  %v731_v40 = vld [vmem:[%s4840_s4 + $0x40] sm:$0xff]  ;;  %s4536_s20 = scalar_lea.vmem [#allocation2], %s2438_s18  ;;  %s2515_s21 = sshll.u32 %s3355_s9, 12 }
  0x16   : > { %s5048_s19 = smov (!%p317_p10, %s2439_s19), 63  ;;  %2695 = vmatprep.subr.mxu1 %v738_v1  ;;  %v730_v41 = vld [vmem:[%s4840_s4 + $0x38] sm:$0xff]  ;;  %v729_v42 = vld [vmem:[%s4840_s4 + $0x30] sm:$0xff]  ;;  %v728_v43 = vld [vmem:[%s4840_s4 + $0x28] sm:$0xff]  ;;  %s4784_s26 = scalar_lea.hbm %s4844_s8, %s2515_s21 }
  0x17   : > { %s2440_s22 = sshll.u32 %s5048_s19, 3  ;;  %v727_v44 = vld [vmem:[%s4840_s4 + $0x20] sm:$0xff]  ;;  %v726_v45 = vld [vmem:[%s4840_s4 + $0x18] sm:$0xff]  ;;  %v725_v46 = vld [vmem:[%s4840_s4 + $0x10] sm:$0xff]  ;;  %s4796_s9 = scalar_lea.sflag [#allocation3], %s313_s17 }
  0x18   : > { %s3397_s25 = scalar_lea.vmem %s4836_s0, %s2440_s22  ;;  %v724_v47 = vld [vmem:[%s4840_s4 + $0x8] sm:$0xff]  ;;  %v723_v48 = vld [vmem:[%s4840_s4] sm:$0xff]  ;;  %v1018_v49 = vld [vmem:[%s4842_s6 + $0x78] sm:$0xff]  ;;  %s3598_s10 = scalar_lea.vmem %s4837_s1, %s2440_s22 }
  0x19   : > { %v329_v2 = vld [vmem:[%s3397_s25] sm:$0xff]  ;;  %v330_v3 = vld [vmem:[%s3397_s25 + $0x8] sm:$0xff]  ;;  %v331_v4 = vld [vmem:[%s3397_s25 + $0x10] sm:$0xff]  ;;  %2775 = vmatprep.subr.mxu0 %v1018_v49  ;;  %s3286_s19 = smov [#allocation2]  }
  0x1a   : > { %2647 = vmatprep.mubr.msk.f32.mxu0 %vm369_vm0, %v329_v2  ;;  %v332_v5 = vld [vmem:[%s3397_s25 + $0x18] sm:$0xff]  ;;  %v333_v6 = vld [vmem:[%s3397_s25 + $0x20] sm:$0xff]  ;;  %v346_v8 = vld [vmem:[%s3397_s25 + $0x88] sm:$0xff]  ;;  %s3226_s22 = sshll.u32 %s3286_s19, 4  ;;  %s3227_s22 = int_to_ptr.vmem [resolvable:$false] %s3226_s22 }
  0x1b   : > { %2648 = vmatmul.mubr.msk.f32.vlgmr.msra.gmra.mxu0 %vm369_vm0, %v330_v3  ;;  %v345_v7 = vld [vmem:[%s3397_s25 + $0x80] sm:$0xff]  ;;  %v347_v9 = vld [vmem:[%s3397_s25 + $0x90] sm:$0xff]  ;;  %v334_v11 = vld [vmem:[%s3397_s25 + $0x28] sm:$0xff]  ;;  %s3228_s12 = scalar_lea.vmem %s3227_s22, 8192 }
  0x1c   : > { %2650 = vmatprep.mubr.msk.f32.mxu0 %vm369_vm0, %v331_v4  ;;  %2671 = vmatprep.mubr.msk.f32.mxu1 %vm369_vm0, %v345_v7  ;;  %v335_v12 = vld [vmem:[%s3397_s25 + $0x30] sm:$0xff]  ;;  %v348_v13 = vld [vmem:[%s3397_s25 + $0x98] sm:$0xff]  ;;  %v349_v14 = vld [vmem:[%s3397_s25 + $0xa0] sm:$0xff] }
  0x1d   : > { %2672 = vmatmul.mubr.msk.f32.vlgmr.msra.gmra.mxu1 %vm369_vm0, %v346_v8  ;;  %v336_v16 = vld [vmem:[%s3397_s25 + $0x38] sm:$0xff]  ;;  %v337_v18 = vld [vmem:[%s3397_s25 + $0x40] sm:$0xff]  ;;  %v350_v19 = vld [vmem:[%s3397_s25 + $0xa8] sm:$0xff]  ;;  %2776 = vmatpush3.msra.mxu0 %v1018_v49 }
  0x1e   : > { %2674 = vmatprep.mubr.msk.f32.mxu1 %vm369_vm0, %v347_v9  ;;  %2696 = vmatpush3.msra.mxu1 %v738_v1  ;;  %v351_v20 = vld [vmem:[%s3397_s25 + $0xb0] sm:$0xff]  ;;  %v338_v22 = vld [vmem:[%s3397_s25 + $0x48] sm:$0xff]  ;;  %v352_v24 = vld [vmem:[%s3397_s25 + $0xb8] sm:$0xff] }
  0x1f   : > { %2651 = vmatmul.mubr.msk.f32.gmra.mxu0 %vm369_vm0, %v332_v5  ;;  %2697 = vmatprep.subr.mxu1 %v737_v10  ;;  %v339_v23 = vld [vmem:[%s3397_s25 + $0x50] sm:$0xff]  ;;  %v353_v25 = vld [vmem:[%s3397_s25 + $0xc0] sm:$0xff]  ;;  %v340_v27 = vld [vmem:[%s3397_s25 + $0x58] sm:$0xff] }
  0x20   : > { %2653 = vmatprep.mubr.msk.f32.mxu0 %vm369_vm0, %v333_v6  ;;  %2698 = vmatpush3.msra.mxu1 %v737_v10  ;;  %v341_v29 = vld [vmem:[%s3397_s25 + $0x60] sm:$0xff]  ;;  %v354_v30 = vld [vmem:[%s3397_s25 + $0xc8] sm:$0xff]  ;;  %v355_v31 = vld [vmem:[%s3397_s25 + $0xd0] sm:$0xff] }
  0x21   : > { %2675 = vmatmul.mubr.msk.f32.gmra.mxu1 %vm369_vm0, %v348_v13  ;;  %2699 = vmatprep.subr.mxu1 %v736_v15  ;;  %v342_v32 = vld [vmem:[%s3397_s25 + $0x68] sm:$0xff]  ;;  %v343_v33 = vld [vmem:[%s3397_s25 + $0x70] sm:$0xff]  ;;  %v356_v34 = vld [vmem:[%s3397_s25 + $0xd8] sm:$0xff] }
  0x22   : > { %2677 = vmatprep.mubr.msk.f32.mxu1 %vm369_vm0, %v349_v14  ;;  %2700 = vmatpush3.msra.mxu1 %v736_v15  ;;  %v357_v35 = vld [vmem:[%s3397_s25 + $0xe0] sm:$0xff]  ;;  %v344_v36 = vld [vmem:[%s3397_s25 + $0x78] sm:$0xff]  ;;  %v358_v37 = vld [vmem:[%s3397_s25 + $0xe8] sm:$0xff] }
  0x23   : > { %2654 = vmatmul.mubr.msk.f32.gmra.mxu0 %vm369_vm0, %v334_v11  ;;  %2701 = vmatprep.subr.mxu1 %v735_v17  ;;  %v359_v38 = vld [vmem:[%s3397_s25 + $0xf0] sm:$0xff]  ;;  %v360_v39 = vld [vmem:[%s3397_s25 + $0xf8] sm:$0xff]  ;;  %v1016_v51 = vld [vmem:[%s4842_s6 + $0x68] sm:$0xff]  ;;  %s2360_s25 = sshll.u32 %s4536_s20, 4  ;;  %s4786_s25 = int_to_ptr.vmem [resolvable:$true] %s2360_s25 }
  0x24   : > { %2656 = vmatprep.mubr.msk.f32.mxu0 %vm369_vm0, %v335_v12  ;;  %2702 = vmatpush3.msra.mxu1 %v735_v17  ;;  %v1017_v50 = vld [vmem:[%s4842_s6 + $0x70] sm:$0xff]  ;;  %v1015_v52 = vld [vmem:[%s4842_s6 + $0x60] sm:$0xff]  ;;  %v1014_v53 = vld [vmem:[%s4842_s6 + $0x58] sm:$0xff]  ;;  %p3229_p0 = scmp.lt.s32.totalorder %s4786_s25, %s3227_s22 }
  0x25   : > { %2678 = vmatmul.mubr.msk.f32.gmra.mxu1 %vm369_vm0, %v350_v19  ;;  %2703 = vmatprep.subr.mxu1 %v734_v21  ;;  %v1013_v54 = vld [vmem:[%s4842_s6 + $0x50] sm:$0xff]  ;;  %v1012_v55 = vld [vmem:[%s4842_s6 + $0x48] sm:$0xff]  ;;  %v3532_v56 = vld [vmem:[%s4839_s3] ss:$0 sm:$0xff] }
  0x26   : > { %2680 = vmatprep.mubr.msk.f32.mxu1 %vm369_vm0, %v351_v20  ;;  %2704 = vmatpush3.msra.mxu1 %v734_v21 }
  0x27   : > { %2657 = vmatmul.mubr.msk.f32.gmra.mxu0 %vm369_vm0, %v336_v16  ;;  %2705 = vmatprep.subr.mxu1 %v733_v26 }
  0x28   : > { %2659 = vmatprep.mubr.msk.f32.mxu0 %vm369_vm0, %v337_v18  ;;  %2706 = vmatpush3.msra.mxu1 %v733_v26 }
  0x29   : > { %2681 = vmatmul.mubr.msk.f32.gmra.mxu1 %vm369_vm0, %v352_v24  ;;  %2707 = vmatprep.subr.mxu1 %v732_v28 }
  0x2a   : > { %2683 = vmatprep.mubr.msk.f32.mxu1 %vm369_vm0, %v353_v25  ;;  %2708 = vmatpush3.msra.mxu1 %v732_v28 }
  0x2b   : > { %2660 = vmatmul.mubr.msk.f32.gmra.mxu0 %vm369_vm0, %v338_v22  ;;  %2709 = vmatprep.subr.mxu1 %v731_v40 }
  0x2c   : > { %2662 = vmatprep.mubr.msk.f32.mxu0 %vm369_vm0, %v339_v23  ;;  %2710 = vmatpush3.msra.mxu1 %v731_v40 }
  0x2d   : > { %2684 = vmatmul.mubr.msk.f32.gmra.mxu1 %vm369_vm0, %v354_v30  ;;  %2711 = vmatprep.subr.mxu1 %v730_v41 }
  0x2e   : > { %2686 = vmatprep.mubr.msk.f32.mxu1 %vm369_vm0, %v355_v31  ;;  %2712 = vmatpush3.msra.mxu1 %v730_v41 }
  0x2f   : > { %2663 = vmatmul.mubr.msk.f32.gmra.mxu0 %vm369_vm0, %v340_v27  ;;  %2713 = vmatprep.subr.mxu1 %v729_v42 }
  0x30   : > { %2665 = vmatprep.mubr.msk.f32.mxu0 %vm369_vm0, %v341_v29  ;;  %2714 = vmatpush3.msra.mxu1 %v729_v42 }
  0x31   : > { %2687 = vmatmul.mubr.msk.f32.gmra.mxu1 %vm369_vm0, %v356_v34  ;;  %2715 = vmatprep.subr.mxu1 %v728_v43 }
  0x32   : > { %2689 = vmatprep.mubr.msk.f32.mxu1 %vm369_vm0, %v357_v35  ;;  %2716 = vmatpush3.msra.mxu1 %v728_v43 }
  0x33   : > { %2666 = vmatmul.mubr.msk.f32.gmra.mxu0 %vm369_vm0, %v342_v32  ;;  %2717 = vmatprep.subr.mxu1 %v727_v44 }
  0x34   : > { %2668 = vmatprep.mubr.msk.f32.mxu0 %vm369_vm0, %v343_v33  ;;  %2718 = vmatpush3.msra.mxu1 %v727_v44 }
  0x35   : > { %2690 = vmatmul.mubr.msk.f32.gmra.mxu1 %vm369_vm0, %v358_v37  ;;  %2719 = vmatprep.subr.mxu1 %v726_v45 }
  0x36   : > { %2692 = vmatprep.mubr.msk.f32.mxu1 %vm369_vm0, %v359_v38  ;;  %2720 = vmatpush3.msra.mxu1 %v726_v45 }
  0x37   : > { %2669 = vmatmul.mubr.msk.f32.gmra.mxu0 %vm369_vm0, %v344_v36  ;;  %2721 = vmatprep.subr.mxu1 %v725_v46 }
  0x38   : > { %2722 = vmatpush3.msra.mxu1 %v725_v46  ;;  %2777 = vmatprep.subr.mxu0 %v1017_v50 }
  0x39   : > { %2693 = vmatmul.mubr.msk.f32.gmra.mxu1 %vm369_vm0, %v360_v39  ;;  %2723 = vmatprep.subr.mxu1 %v724_v47 }
  0x3a   : > { %2724 = vmatpush3.msra.mxu1 %v724_v47  ;;  %2778 = vmatpush3.msra.mxu0 %v1017_v50 }
  0x3b   : > { %2725 = vmatprep.subr.mxu1 %v723_v48  ;;  %2779 = vmatprep.subr.mxu0 %v1016_v51 }
  0x3c   : > { %2726 = vmatpush3.msra.mxu1 %v723_v48  ;;  %2780 = vmatpush3.msra.mxu0 %v1016_v51 }
  0x3d   : > { %2781 = vmatprep.subr.mxu0 %v1015_v52 }
  0x3e   : > { %2782 = vmatpush3.msra.mxu0 %v1015_v52 }
  0x3f   : > { %2783 = vmatprep.subr.mxu0 %v1014_v53 }
  0x40   : > { %2784 = vmatpush3.msra.mxu0 %v1014_v53 }
  0x41   : > { %2785 = vmatprep.subr.mxu0 %v1013_v54 }
  0x42   : > { %2786 = vmatpush3.msra.mxu0 %v1013_v54 }
  0x43   : > { %2787 = vmatprep.subr.mxu0 %v1012_v55 }
  0x44   : > { %2788 = vmatpush3.msra.mxu0 %v1012_v55 }
  0xdb   : > { %v2649_v57 = vpop.f32.mrf.mxu0 }
  0xdc   : > { %v538_v58 = vadd.f32 %v2649_v57, %v3532_v56 }
  0xdd   : > { %v532_v59 = vpop.f32.mrf.mxu0  ;;  %v2673_v2 = vpop.f32.mrf.mxu1 }
  0xde   : > { %v533_v60 = vadd.f32 %v3532_v56, %v532_v59  ;;  %v618_v42 = vadd.f32 %v2673_v2, %v3532_v56 }
  0xdf   : > { %v2652_v61 = vpop.f32.mrf.mxu0  ;;  %v612_v7 = vpop.f32.mrf.mxu1 }
  0xe0   : > { %2902 = vtanh.f32 %v533_v60  ;;  %v548_v62 = vadd.f32 %v2652_v61, %v3532_v56  ;;  %v613_v34 = vadd.f32 %v3532_v56, %v612_v7 }
  0xe1   : > { %2904 = vtanh.f32 %v538_v58  ;;  %v542_v63 = vpop.f32.mrf.mxu0  ;;  %v2676_v10 = vpop.f32.mrf.mxu1 }
  0xe2   : > { %v543_v0 = vadd.f32 %v3532_v56, %v542_v63  ;;  %v628_v47 = vadd.f32 %v2676_v10, %v3532_v56 }
  0xe3   : > { %v2655_v1 = vpop.f32.mrf.mxu0  ;;  %v622_v16 = vpop.f32.mrf.mxu1 }
  0xe4   : > { %2906 = vtanh.f32 %v543_v0  ;;  %v558_v3 = vadd.f32 %v2655_v1, %v3532_v56  ;;  %v623_v45 = vadd.f32 %v3532_v56, %v622_v16 }
  0xe5   : > { %2908 = vtanh.f32 %v548_v62  ;;  %v552_v4 = vpop.f32.mrf.mxu0  ;;  %v2679_v20 = vpop.f32.mrf.mxu1 }
  0xe6   : > { %v553_v5 = vadd.f32 %v3532_v56, %v552_v4  ;;  %2910 = vtanh.f32 %v558_v3  ;;  %v638_v53 = vadd.f32 %v2679_v20, %v3532_v56 }
  0xe7   : > { %v2658_v6 = vpop.f32.mrf.mxu0  ;;  %v632_v27 = vpop.f32.mrf.mxu1 }
  0xe8   : > { %2912 = vtanh.f32 %v553_v5  ;;  %v568_v8 = vadd.f32 %v2658_v6, %v3532_v56  ;;  %v633_v50 = vadd.f32 %v3532_v56, %v632_v27  ;;  %v1009_v27 = vld [vmem:[%s4842_s6 + $0x30] sm:$0xff] }
  0xe9   : > { %v562_v9 = vpop.f32.mrf.mxu0  ;;  %v2682_v32 = vpop.f32.mrf.mxu1 }
  0xea   : > { %v563_v11 = vadd.f32 %v3532_v56, %v562_v9  ;;  %2914 = vtanh.f32 %v568_v8  ;;  %v648_v60 = vadd.f32 %v2682_v32, %v3532_v56  ;;  %v1004_v32 = vld [vmem:[%s4842_s6 + $0x8] sm:$0xff] }
  0xeb   : > { %v2661_v12 = vpop.f32.mrf.mxu0  ;;  %v642_v40 = vpop.f32.mrf.mxu1 }
  0xec   : > { %2916 = vtanh.f32 %v563_v11  ;;  %v578_v13 = vadd.f32 %v2661_v12, %v3532_v56  ;;  %v643_v55 = vadd.f32 %v3532_v56, %v642_v40  ;;  %v1676_v40 = vld [vmem:[%s3598_s10 + $0x30] sm:$0xff] }
  0xed   : > { %v2903_v14 = vpop.eup %2902  ;;  %v572_v15 = vpop.f32.mrf.mxu0 }
  0xee   : > { %v2905_v17 = vpop.eup %2904  ;;  %2727 = vmatprep.mubr.f32.mxu1 %v2903_v14  ;;  %v573_v18 = vadd.f32 %v3532_v56, %v572_v15  ;;  %2918 = vtanh.f32 %v578_v13  ;;  %v2685_v43 = vpop.f32.mrf.mxu1 }
  0xef   : > { %2728 = vmatmul.mubr.f32.vlgmr.msra.gmra.mxu1 %v2905_v17  ;;  %v2664_v19 = vpop.f32.mrf.mxu0  ;;  %v658_v1 = vadd.f32 %v2685_v43, %v3532_v56  ;;  %v1670_v43 = vld [vmem:[%s3598_s10] sm:$0xff] }
  0xf0   : > { %2920 = vtanh.f32 %v573_v18  ;;  %v588_v21 = vadd.f32 %v2664_v19, %v3532_v56  ;;  %v652_v48 = vpop.f32.mrf.mxu1 }
  0xf1   : > { %v2907_v22 = vpop.eup %2906  ;;  %v582_v23 = vpop.f32.mrf.mxu0  ;;  %v653_v63 = vadd.f32 %v3532_v56, %v652_v48  ;;  %v1683_v48 = vld [vmem:[%s3598_s10 + $0x68] sm:$0xff] }
  0xf2   : > { %v2909_v24 = vpop.eup %2908  ;;  %2730 = vmatprep.mubr.f32.mxu1 %v2907_v22  ;;  %v583_v25 = vadd.f32 %v3532_v56, %v582_v23  ;;  %2922 = vtanh.f32 %v588_v21  ;;  %v2688_v52 = vpop.f32.mrf.mxu1 }
  0xf3   : > { %2731 = vmatmul.mubr.f32.gmra.mxu1 %v2909_v24  ;;  %v2667_v26 = vpop.f32.mrf.mxu0  ;;  %v2911_v28 = vpop.eup %2910  ;;  %v668_v7 = vadd.f32 %v2688_v52, %v3532_v56  ;;  %v1687_v52 = vld [vmem:[%s3598_s10 + $0x88] sm:$0xff] }
  0xf4   : > { %2924 = vtanh.f32 %v583_v25  ;;  %v598_v29 = vadd.f32 %v2667_v26, %v3532_v56  ;;  %v662_v58 = vpop.f32.mrf.mxu1  ;;  %v1010_v26 = vld [vmem:[%s4842_s6 + $0x38] sm:$0xff] }
  0xf5   : > { %v2913_v30 = vpop.eup %2912  ;;  %v592_v31 = vpop.f32.mrf.mxu0  ;;  %v663_v4 = vadd.f32 %v3532_v56, %v662_v58  ;;  %v1692_v58 = vld [vmem:[%s3598_s10 + $0xb0] sm:$0xff] }
  0xf6   : > { %2733 = vmatprep.mubr.f32.mxu1 %v2913_v30  ;;  %v593_v33 = vadd.f32 %v3532_v56, %v592_v31  ;;  %2926 = vtanh.f32 %v598_v29  ;;  %v2691_v61 = vpop.f32.mrf.mxu1  ;;  %v1007_v29 = vld [vmem:[%s4842_s6 + $0x20] sm:$0xff]  ;;  %v1006_v30 = vld [vmem:[%s4842_s6 + $0x18] sm:$0xff]  ;;  %v1005_v31 = vld [vmem:[%s4842_s6 + $0x10] sm:$0xff] }
  0xf7   : > { %2734 = vmatmul.mubr.f32.gmra.mxu1 %v2911_v28  ;;  %v2670_v35 = vpop.f32.mrf.mxu0  ;;  %v2915_v36 = vpop.eup %2914  ;;  %v678_v12 = vadd.f32 %v2691_v61, %v3532_v56  ;;  %v1008_v28 = vld [vmem:[%s4842_s6 + $0x28] sm:$0xff] }
  0xf8   : > { %2928 = vtanh.f32 %v593_v33  ;;  %v608_v37 = vadd.f32 %v2670_v35, %v3532_v56  ;;  %v672_v2 = vpop.f32.mrf.mxu1  ;;  %v1003_v33 = vld [vmem:[%s4842_s6] sm:$0xff]  ;;  %v1671_v35 = vld [vmem:[%s3598_s10 + $0x8] sm:$0xff] }
  0xf9   : > { %v2917_v38 = vpop.eup %2916  ;;  %v602_v39 = vpop.f32.mrf.mxu0  ;;  %2930 = vtanh.f32 %v613_v34  ;;  %v673_v9 = vadd.f32 %v3532_v56, %v672_v2  ;;  %v3284_v34 = vmov 0   ;;  %v1695_v61 = vld [vmem:[%s3598_s10 + $0xc8] sm:$0xff]  ;;  %v1700_v2 = vld [vmem:[%s3598_s10 + $0xf0] sm:$0xff] }
  0xfa   : > { %2736 = vmatprep.mubr.f32.mxu1 %v2917_v38  ;;  %v603_v41 = vadd.f32 %v3532_v56, %v602_v39  ;;  %2932 = vtanh.f32 %v608_v37  ;;  %v2694_v6 = vpop.f32.mrf.mxu1  ;;  %2901 = vset.pattern.permute.xlu1 %v3284_v34  ;;  %v1673_v37 = vld [vmem:[%s3598_s10 + $0x18] sm:$0xff]  ;;  %v1674_v38 = vld [vmem:[%s3598_s10 + $0x20] sm:$0xff]  ;;  %v1675_v39 = vld [vmem:[%s3598_s10 + $0x28] sm:$0xff] }
  0xfb   : > { %2737 = vmatmul.mubr.f32.gmra.mxu1 %v2915_v36  ;;  %v2919_v44 = vpop.eup %2918  ;;  %v688_v16 = vadd.f32 %v2694_v6, %v3532_v56  ;;  %2900 = vset.pattern.permute.xlu0 %v3284_v34  ;;  %v1672_v36 = vld [vmem:[%s3598_s10 + $0x10] sm:$0xff] }
  0xfc   : > { %2934 = vtanh.f32 %v603_v41  ;;  %v682_v11 = vpop.f32.mrf.mxu1  ;;  %1706 = vperm.xlu1 %2901, %v1671_v35   ;;  %v1677_v41 = vld [vmem:[%s3598_s10 + $0x38] sm:$0xff]  ;;  %1703 = vperm.xlu0 %2900, %v1670_v43  }
  0xfd   : > { %v2921_v46 = vpop.eup %2920  ;;  %2936 = vtanh.f32 %v618_v42  ;;  %v683_v14 = vadd.f32 %v3532_v56, %v682_v11  ;;  %v1011_v56 = vld [vmem:[%s4842_s6 + $0x40] sm:$0xff] }
  0xfe   : > { %2739 = vmatprep.mubr.f32.mxu1 %v2921_v46  ;;  %2938 = vtanh.f32 %v623_v45  ;;  %2789 = vmatprep.subr.mxu0 %v1011_v56  ;;  %v1678_v42 = vld [vmem:[%s3598_s10 + $0x40] sm:$0xff]  ;;  %v1679_v45 = vld [vmem:[%s3598_s10 + $0x48] sm:$0xff]  ;;  %v1681_v46 = vld [vmem:[%s3598_s10 + $0x58] sm:$0xff] }
  0xff   : > { %2740 = vmatmul.mubr.f32.gmra.mxu1 %v2919_v44  ;;  %v2923_v49 = vpop.eup %2922  ;;  %2940 = vtanh.f32 %v628_v47  ;;  %2790 = vmatpush3.msra.mxu0 %v1011_v56  ;;  %v1680_v44 = vld [vmem:[%s3598_s10 + $0x50] sm:$0xff]  ;;  %v1682_v47 = vld [vmem:[%s3598_s10 + $0x60] sm:$0xff] }
 0x100   : > { %2942 = vtanh.f32 %v633_v50  ;;  %2791 = vmatprep.subr.mxu0 %v1010_v26  ;;  %1709 = vperm.xlu1 %2901, %v1672_v36   ;;  %v1685_v50 = vld [vmem:[%s3598_s10 + $0x78] sm:$0xff] }
 0x101   : > { %v2925_v51 = vpop.eup %2924  ;;  %2944 = vtanh.f32 %v638_v53  ;;  %2792 = vmatpush3.msra.mxu0 %v1010_v26  ;;  %1730 = vperm.xlu0 %2900, %v1679_v45   ;;  %v1688_v53 = vld [vmem:[%s3598_s10 + $0x90] sm:$0xff] }
 0x102   : > { %2742 = vmatprep.mubr.f32.mxu1 %v2925_v51  ;;  %2946 = vtanh.f32 %v643_v55  ;;  %2793 = vmatprep.subr.mxu0 %v1009_v27  ;;  %v1686_v51 = vld [vmem:[%s3598_s10 + $0x80] sm:$0xff] }
 0x103   : > { %2743 = vmatmul.mubr.f32.gmra.mxu1 %v2923_v49  ;;  %v2927_v54 = vpop.eup %2926  ;;  %2948 = vtanh.f32 %v648_v60  ;;  %2794 = vmatpush3.msra.mxu0 %v1009_v27  ;;  %v1684_v49 = vld [vmem:[%s3598_s10 + $0x70] sm:$0xff]  ;;  %v1690_v55 = vld [vmem:[%s3598_s10 + $0xa0] sm:$0xff] }
 0x104   : > { %2950 = vtanh.f32 %v653_v63  ;;  %2795 = vmatprep.subr.mxu0 %v1008_v28  ;;  %1712 = vperm.xlu1 %2901, %v1673_v37   ;;  %v1694_v60 = vld [vmem:[%s3598_s10 + $0xc0] sm:$0xff]  ;;  %v1697_v63 = vld [vmem:[%s3598_s10 + $0xd8] sm:$0xff] }
 0x105   : > { %v2929_v57 = vpop.eup %2928  ;;  %2952 = vtanh.f32 %v658_v1  ;;  %2796 = vmatpush3.msra.mxu0 %v1008_v28  ;;  %1736 = vperm.xlu0 %2900, %v1681_v46   ;;  %v1699_v1 = vld [vmem:[%s3598_s10 + $0xe8] sm:$0xff] }
 0x106   : > { %2745 = vmatprep.mubr.f32.mxu1 %v2929_v57  ;;  %v2931_v59 = vpop.eup %2930  ;;  %2954 = vtanh.f32 %v663_v4  ;;  %2797 = vmatprep.subr.mxu0 %v1007_v29  ;;  %v1691_v57 = vld [vmem:[%s3598_s10 + $0xa8] sm:$0xff]  ;;  %v3635_v4 = vld [vmem:[%s4841_s5] ss:$0 sm:$0xff] }
 0x107   : > { %2746 = vmatmul.mubr.f32.gmra.mxu1 %v2927_v54  ;;  %v2933_v62 = vpop.eup %2932  ;;  %2956 = vtanh.f32 %v668_v7  ;;  %2798 = vmatpush3.msra.mxu0 %v1007_v29  ;;  %v1689_v54 = vld [vmem:[%s3598_s10 + $0x98] sm:$0xff] }
 0x108   : > { %2958 = vtanh.f32 %v673_v9  ;;  %2799 = vmatprep.subr.mxu0 %v1006_v30  ;;  %1715 = vperm.xlu1 %2901, %v1674_v38  }
 0x109   : > { %v2935_v0 = vpop.eup %2934  ;;  %2960 = vtanh.f32 %v678_v12  ;;  %2800 = vmatpush3.msra.mxu0 %v1006_v30  ;;  %1742 = vperm.xlu0 %2900, %v1683_v48  }
 0x10a   : > { %2748 = vmatprep.mubr.f32.mxu1 %v2935_v0  ;;  %v2937_v3 = vpop.eup %2936  ;;  %2962 = vtanh.f32 %v683_v14  ;;  %2801 = vmatprep.subr.mxu0 %v1005_v31  ;;  %v1698_v0 = vld [vmem:[%s3598_s10 + $0xe0] sm:$0xff] }
 0x10b   : > { %2749 = vmatmul.mubr.f32.gmra.mxu1 %v2933_v62  ;;  %v2939_v5 = vpop.eup %2938  ;;  %2964 = vtanh.f32 %v688_v16  ;;  %2802 = vmatpush3.msra.mxu0 %v1005_v31  ;;  %v1696_v62 = vld [vmem:[%s3598_s10 + $0xd0] sm:$0xff] }
 0x10c   : > { %2751 = vmatprep.mubr.f32.mxu1 %v2931_v59  ;;  %v2941_v8 = vpop.eup %2940  ;;  %2803 = vmatprep.subr.mxu0 %v1004_v32  ;;  %v1693_v59 = vld [vmem:[%s3598_s10 + $0xb8] sm:$0xff] }
 0x10d   : > { %v2943_v10 = vpop.eup %2942  ;;  %2804 = vmatpush3.msra.mxu0 %v1004_v32  ;;  %1718 = vperm.xlu1 %2901, %v1675_v39  }
 0x10e   : > { %v2945_v13 = vpop.eup %2944  ;;  %2805 = vmatprep.subr.mxu0 %v1003_v33  ;;  %1748 = vperm.xlu0 %2900, %v1685_v50  }
 0x10f   : > { %2752 = vmatmul.mubr.f32.gmra.mxu1 %v2937_v3  ;;  %v2947_v15 = vpop.eup %2946  ;;  %2806 = vmatpush3.msra.mxu0 %v1003_v33  ;;  %v1701_v3 = vld [vmem:[%s3598_s10 + $0xf8] sm:$0xff]  ;;  %s3222_s10 = scalar_lea.vmem %s4786_s25, 4096 }
 0x110   : > { %2754 = vmatprep.mubr.f32.mxu1 %v2939_v5  ;;  %v2949_v17 = vpop.eup %2948  ;;  %p3223_p11 = scmp.ne.s32.totalorder %s4786_s25, %s3222_s10  ;;  %p3230_p1 = scmp.lt.s32.totalorder %s3228_s12, %s3222_s10 }
 0x111   : > { %v2951_v18 = vpop.eup %2950  ;;  %1721 = vperm.xlu1 %2901, %v1676_v40  }
 0x112   : > { %v2953_v19 = vpop.eup %2952  ;;  %1754 = vperm.xlu0 %2900, %v1687_v52   ;;  %p3224_p12 = pnand %p3223_p11, %p3372_p5  ;;  %p3231_p2 = por %p3230_p1, %p3229_p0 }
 0x113   : > { %2755 = vmatmul.mubr.f32.gmra.mxu1 %v2941_v8  ;;  %v2955_v20 = vpop.eup %2954 }
 0x114   : > { %2757 = vmatprep.mubr.f32.mxu1 %v2943_v10  ;;  %v2957_v21 = vpop.eup %2956  ;;  %p3225_p13 = pneg %p3224_p12 }
 0x115   : > { %v2959_v22 = vpop.eup %2958  ;;  %1724 = vperm.xlu1 %2901, %v1677_v41  }
 0x116   : > { %v2961_v23 = vpop.eup %2960  ;;  %1760 = vperm.xlu0 %2900, %v1689_v54   ;;  %p3232_p3 = pnand %p3231_p2, %p3225_p13 }
 0x117   : > { %2758 = vmatmul.mubr.f32.gmra.mxu1 %v2945_v13  ;;  %v2963_v24 = vpop.eup %2962 }
 0x118   : > { %2760 = vmatprep.mubr.f32.mxu1 %v2947_v15  ;;  %v2965_v25 = vpop.eup %2964 }
 0x119   : > { %1727 = vperm.xlu1 %2901, %v1678_v42  }
 0x11a   : > { %1766 = vperm.xlu0 %2900, %v1691_v57  }
 0x11b   : > { %2761 = vmatmul.mubr.f32.gmra.mxu1 %v2949_v17 }
 0x11c   : > { %2763 = vmatprep.mubr.f32.mxu1 %v2951_v18 }
 0x11d   : > { %1733 = vperm.xlu1 %2901, %v1680_v44  }
 0x11e   : > { %1772 = vperm.xlu0 %2900, %v1693_v59  }
 0x11f   : > { %2764 = vmatmul.mubr.f32.gmra.mxu1 %v2953_v19 }
 0x120   : > { %2766 = vmatprep.mubr.f32.mxu1 %v2955_v20 }
 0x121   : > { %1739 = vperm.xlu1 %2901, %v1682_v47  }
 0x122   : > { %1778 = vperm.xlu0 %2900, %v1695_v61  }
 0x123   : > { %2767 = vmatmul.mubr.f32.gmra.mxu1 %v2957_v21 }
 0x124   : > { %2769 = vmatprep.mubr.f32.mxu1 %v2959_v22 }
 0x125   : > { %1745 = vperm.xlu1 %2901, %v1684_v49  }
 0x126   : > { %1784 = vperm.xlu0 %2900, %v1697_v63  }
 0x127   : > { %2770 = vmatmul.mubr.f32.gmra.mxu1 %v2961_v23 }
 0x128   : > { %2772 = vmatprep.mubr.f32.mxu1 %v2963_v24 }
 0x129   : > { %1751 = vperm.xlu1 %2901, %v1686_v51  }
 0x12a   : > { %1790 = vperm.xlu0 %2900, %v1699_v1  }
 0x12b   : > { %2773 = vmatmul.mubr.f32.gmra.mxu1 %v2965_v25 }
 0x12d   : > { %1757 = vperm.xlu1 %2901, %v1688_v53  }
 0x12e   : > { %1796 = vperm.xlu0 %2900, %v1701_v3  }
 0x131   : > { %1763 = vperm.xlu1 %2901, %v1690_v55  }
 0x135   : > { %1769 = vperm.xlu1 %2901, %v1692_v58  }
 0x139   : > { %1775 = vperm.xlu1 %2901, %v1694_v60  }
 0x13d   : > { %1781 = vperm.xlu1 %2901, %v1696_v62  }
 0x141   : > { %1787 = vperm.xlu1 %2901, %v1698_v0  }
 0x145   : > { %1793 = vperm.xlu1 %2901, %v1700_v2  }
 0x1af   : > { %v2729_v5 = vpop.f32.mrf.mxu1 }
 0x1b0   : > { %v818_v6 = vadd.f32 %v2729_v5, %v3635_v4 }
 0x1b1   : > { %v812_v7 = vpop.f32.mrf.mxu1 }
 0x1b2   : > { %v813_v8 = vadd.f32 %v3635_v4, %v812_v7 }
 0x1b3   : > { %v2732_v9 = vpop.f32.mrf.mxu1 }
 0x1b4   : > { %2966 = vtanh.f32 %v813_v8  ;;  %v828_v10 = vadd.f32 %v2732_v9, %v3635_v4 }
 0x1b5   : > { %2968 = vtanh.f32 %v818_v6  ;;  %v822_v11 = vpop.f32.mrf.mxu1 }
 0x1b6   : > { %v823_v12 = vadd.f32 %v3635_v4, %v822_v11 }
 0x1b7   : > { %v2735_v13 = vpop.f32.mrf.mxu1 }
 0x1b8   : > { %2970 = vtanh.f32 %v823_v12  ;;  %v838_v14 = vadd.f32 %v2735_v13, %v3635_v4 }
 0x1b9   : > { %2972 = vtanh.f32 %v828_v10  ;;  %v832_v15 = vpop.f32.mrf.mxu1 }
 0x1ba   : > { %v833_v16 = vadd.f32 %v3635_v4, %v832_v15  ;;  %2974 = vtanh.f32 %v838_v14 }
 0x1bb   : > { %v2738_v17 = vpop.f32.mrf.mxu1 }
 0x1bc   : > { %2976 = vtanh.f32 %v833_v16  ;;  %v848_v18 = vadd.f32 %v2738_v17, %v3635_v4 }
 0x1bd   : > { %v842_v19 = vpop.f32.mrf.mxu1 }
 0x1be   : > { %v843_v20 = vadd.f32 %v3635_v4, %v842_v19  ;;  %2978 = vtanh.f32 %v848_v18 }
 0x1bf   : > { %v2741_v21 = vpop.f32.mrf.mxu1 }
 0x1c0   : > { %2980 = vtanh.f32 %v843_v20  ;;  %v858_v22 = vadd.f32 %v2741_v21, %v3635_v4 }
 0x1c1   : > { %v2967_v23 = vpop.eup %2966  ;;  %v852_v24 = vpop.f32.mrf.mxu1 }
 0x1c2   : > { %v2969_v25 = vpop.eup %2968  ;;  %2807 = vmatprep.mubr.f32.mxu0 %v2967_v23  ;;  %v853_v56 = vadd.f32 %v3635_v4, %v852_v24  ;;  %2982 = vtanh.f32 %v858_v22 }
 0x1c3   : > { %2808 = vmatmul.mubr.f32.vlgmr.msra.gmra.mxu0 %v2969_v25  ;;  %v2744_v26 = vpop.f32.mrf.mxu1 }
 0x1c4   : > { %2984 = vtanh.f32 %v853_v56  ;;  %v868_v27 = vadd.f32 %v2744_v26, %v3635_v4 }
 0x1c5   : > { %v2971_v28 = vpop.eup %2970  ;;  %v862_v29 = vpop.f32.mrf.mxu1 }
 0x1c6   : > { %v2973_v30 = vpop.eup %2972  ;;  %2810 = vmatprep.mubr.f32.mxu0 %v2971_v28  ;;  %v863_v31 = vadd.f32 %v3635_v4, %v862_v29  ;;  %2986 = vtanh.f32 %v868_v27 }
 0x1c7   : > { %2811 = vmatmul.mubr.f32.gmra.mxu0 %v2973_v30  ;;  %v2747_v32 = vpop.f32.mrf.mxu1  ;;  %v2975_v33 = vpop.eup %2974 }
 0x1c8   : > { %2988 = vtanh.f32 %v863_v31  ;;  %v878_v34 = vadd.f32 %v2747_v32, %v3635_v4 }
 0x1c9   : > { %v2977_v35 = vpop.eup %2976  ;;  %v872_v36 = vpop.f32.mrf.mxu1 }
 0x1ca   : > { %2813 = vmatprep.mubr.f32.mxu0 %v2977_v35  ;;  %v873_v37 = vadd.f32 %v3635_v4, %v872_v36  ;;  %2990 = vtanh.f32 %v878_v34 }
 0x1cb   : > { %2814 = vmatmul.mubr.f32.gmra.mxu0 %v2975_v33  ;;  %v2750_v38 = vpop.f32.mrf.mxu1  ;;  %v2979_v39 = vpop.eup %2978 }
 0x1cc   : > { %2992 = vtanh.f32 %v873_v37  ;;  %v888_v40 = vadd.f32 %v2750_v38, %v3635_v4  ;;  %v3674_v38 = vld [vmem:[%s4843_s7] ss:$0 sm:$0xff] }
 0x1cd   : > { %v2981_v41 = vpop.eup %2980  ;;  %v882_v42 = vpop.f32.mrf.mxu1 }
 0x1ce   : > { %2816 = vmatprep.mubr.f32.mxu0 %v2981_v41  ;;  %v883_v43 = vadd.f32 %v3635_v4, %v882_v42  ;;  %2994 = vtanh.f32 %v888_v40 }
 0x1cf   : > { %2817 = vmatmul.mubr.f32.gmra.mxu0 %v2979_v39  ;;  %v2753_v44 = vpop.f32.mrf.mxu1  ;;  %v2983_v45 = vpop.eup %2982 }
 0x1d0   : > { %2996 = vtanh.f32 %v883_v43  ;;  %v898_v46 = vadd.f32 %v2753_v44, %v3635_v4 }
 0x1d1   : > { %v2985_v47 = vpop.eup %2984  ;;  %v892_v48 = vpop.f32.mrf.mxu1 }
 0x1d2   : > { %2819 = vmatprep.mubr.f32.mxu0 %v2985_v47  ;;  %v893_v49 = vadd.f32 %v3635_v4, %v892_v48  ;;  %2998 = vtanh.f32 %v898_v46 }
 0x1d3   : > { %2820 = vmatmul.mubr.f32.gmra.mxu0 %v2983_v45  ;;  %v2756_v50 = vpop.f32.mrf.mxu1  ;;  %v2987_v51 = vpop.eup %2986 }
 0x1d4   : > { %3000 = vtanh.f32 %v893_v49  ;;  %v908_v52 = vadd.f32 %v2756_v50, %v3635_v4 }
 0x1d5   : > { %v2989_v53 = vpop.eup %2988  ;;  %v902_v54 = vpop.f32.mrf.mxu1 }
 0x1d6   : > { %2822 = vmatprep.mubr.f32.mxu0 %v2989_v53  ;;  %v903_v55 = vadd.f32 %v3635_v4, %v902_v54  ;;  %3002 = vtanh.f32 %v908_v52 }
 0x1d7   : > { %2823 = vmatmul.mubr.f32.gmra.mxu0 %v2987_v51  ;;  %v2759_v57 = vpop.f32.mrf.mxu1  ;;  %v2991_v58 = vpop.eup %2990 }
 0x1d8   : > { %3004 = vtanh.f32 %v903_v55  ;;  %v918_v59 = vadd.f32 %v2759_v57, %v3635_v4 }
 0x1d9   : > { %v2993_v60 = vpop.eup %2992  ;;  %v912_v61 = vpop.f32.mrf.mxu1 }
 0x1da   : > { %2825 = vmatprep.mubr.f32.mxu0 %v2993_v60  ;;  %v913_v62 = vadd.f32 %v3635_v4, %v912_v61  ;;  %3006 = vtanh.f32 %v918_v59 }
 0x1db   : > { %2826 = vmatmul.mubr.f32.gmra.mxu0 %v2991_v58  ;;  %v2762_v63 = vpop.f32.mrf.mxu1  ;;  %v2995_v0 = vpop.eup %2994 }
 0x1dc   : > { %3008 = vtanh.f32 %v913_v62  ;;  %v928_v1 = vadd.f32 %v2762_v63, %v3635_v4 }
 0x1dd   : > { %v2997_v2 = vpop.eup %2996  ;;  %v922_v3 = vpop.f32.mrf.mxu1 }
 0x1de   : > { %2828 = vmatprep.mubr.f32.mxu0 %v2997_v2  ;;  %v923_v5 = vadd.f32 %v3635_v4, %v922_v3  ;;  %3010 = vtanh.f32 %v928_v1 }
 0x1df   : > { %2829 = vmatmul.mubr.f32.gmra.mxu0 %v2995_v0  ;;  %v2765_v6 = vpop.f32.mrf.mxu1  ;;  %v2999_v7 = vpop.eup %2998 }
 0x1e0   : > { %3012 = vtanh.f32 %v923_v5  ;;  %v938_v8 = vadd.f32 %v2765_v6, %v3635_v4 }
 0x1e1   : > { %v3001_v9 = vpop.eup %3000  ;;  %v932_v10 = vpop.f32.mrf.mxu1 }
 0x1e2   : > { %2831 = vmatprep.mubr.f32.mxu0 %v3001_v9  ;;  %v933_v11 = vadd.f32 %v3635_v4, %v932_v10  ;;  %3014 = vtanh.f32 %v938_v8 }
 0x1e3   : > { %2832 = vmatmul.mubr.f32.gmra.mxu0 %v2999_v7  ;;  %v2768_v12 = vpop.f32.mrf.mxu1  ;;  %v3003_v13 = vpop.eup %3002 }
 0x1e4   : > { %3016 = vtanh.f32 %v933_v11  ;;  %v948_v14 = vadd.f32 %v2768_v12, %v3635_v4 }
 0x1e5   : > { %v3005_v15 = vpop.eup %3004  ;;  %v942_v16 = vpop.f32.mrf.mxu1 }
 0x1e6   : > { %2834 = vmatprep.mubr.f32.mxu0 %v3005_v15  ;;  %v943_v17 = vadd.f32 %v3635_v4, %v942_v16  ;;  %3018 = vtanh.f32 %v948_v14  ;;  %v3740_v14 = vpop.permute.xlu1 %1706 }
 0x1e7   : > { %2835 = vmatmul.mubr.f32.gmra.mxu0 %v3003_v13  ;;  %v2771_v18 = vpop.f32.mrf.mxu1  ;;  %v3007_v19 = vpop.eup %3006 }
 0x1e8   : > { %3020 = vtanh.f32 %v943_v17  ;;  %v958_v20 = vadd.f32 %v2771_v18, %v3635_v4 }
 0x1e9   : > { %v3009_v21 = vpop.eup %3008  ;;  %v952_v22 = vpop.f32.mrf.mxu1 }
 0x1ea   : > { %2837 = vmatprep.mubr.f32.mxu0 %v3009_v21  ;;  %v953_v23 = vadd.f32 %v3635_v4, %v952_v22  ;;  %3022 = vtanh.f32 %v958_v20 }
 0x1eb   : > { %2838 = vmatmul.mubr.f32.gmra.mxu0 %v3007_v19  ;;  %v2774_v24 = vpop.f32.mrf.mxu1  ;;  %v3011_v25 = vpop.eup %3010 }
 0x1ec   : > { %3024 = vtanh.f32 %v953_v23  ;;  %v968_v56 = vadd.f32 %v2774_v24, %v3635_v4  ;;  %v3755_v24 = vpop.permute.xlu1 %1709 }
 0x1ed   : > { %v3013_v26 = vpop.eup %3012  ;;  %v962_v27 = vpop.f32.mrf.mxu1 }
 0x1ee   : > { %2840 = vmatprep.mubr.f32.mxu0 %v3013_v26  ;;  %v963_v28 = vadd.f32 %v3635_v4, %v962_v27  ;;  %3026 = vtanh.f32 %v968_v56  ;;  %v1251_v4 = vlaneseq }
 0x1ef   : > { %2841 = vmatmul.mubr.f32.gmra.mxu0 %v3011_v25  ;;  %v3015_v29 = vpop.eup %3014 }
 0x1f0   : > { %3028 = vtanh.f32 %v963_v28  ;;  %v3669_v37 = vand.u32 127, %v1251_v4 }
 0x1f1   : > { %v3017_v30 = vpop.eup %3016 }
 0x1f2   : > { %2843 = vmatprep.mubr.f32.mxu0 %v3017_v30  ;;  %vm2118_vm1 = vcmp.eq.s32.totalorder %v3669_v37, 4  ;;  %vm1253_vm2 = vcmp.lt.s32.totalorder %v3669_v37, 4  ;;  %vm1799_vm3 = vcmp.eq.s32.totalorder %v3669_v37, %v3740_v14  ;;  %vm1800_vm6 = vcmp.eq.s32.totalorder %v3669_v37, %v3755_v24 }
 0x1f3   : > { %2844 = vmatmul.mubr.f32.gmra.mxu0 %v3015_v29  ;;  %v3019_v31 = vpop.eup %3018 }
 0x1f5   : > { %v3021_v32 = vpop.eup %3020 }
 0x1f6   : > { %2846 = vmatprep.mubr.f32.mxu0 %v3021_v32 }
 0x1f7   : > { %2847 = vmatmul.mubr.f32.gmra.mxu0 %v3019_v31  ;;  %v3023_v33 = vpop.eup %3022 }
 0x1f9   : > { %v3025_v34 = vpop.eup %3024 }
 0x1fa   : > { %2849 = vmatprep.mubr.f32.mxu0 %v3025_v34 }
 0x1fb   : > { %2850 = vmatmul.mubr.f32.gmra.mxu0 %v3023_v33  ;;  %v3027_v35 = vpop.eup %3026 }
 0x1fd   : > { %v3029_v36 = vpop.eup %3028 }
 0x1fe   : > { %2852 = vmatprep.mubr.f32.mxu0 %v3029_v36 }
 0x1ff   : > { %2853 = vmatmul.mubr.f32.gmra.mxu0 %v3027_v35 }
 0x283   : > { %v2809_v39 = vpop.f32.mrf.mxu0 }
 0x284   : > { %v1098_v40 = vadd.f32 %v2809_v39, %v3674_v38 }
 0x285   : > { %v1092_v41 = vpop.f32.mrf.mxu0 }
 0x286   : > { %v1093_v42 = vadd.f32 %v3674_v38, %v1092_v41  ;;  %v2120_v43 = vsel %vm2118_vm1, %v1098_v40, 0.0  ;;  %v3684_v44 = vsel %vm1253_vm2, %v1098_v40, -1e+30 }
 0x287   : > { %2153 = vadd.xlane.f32.xlu1 %v2120_v43  ;;  %1288 = vmax.xlane.f32.xlu0 %v3684_v44  ;;  %v2812_v45 = vpop.f32.mrf.mxu0 }
 0x288   : > { %v1108_v46 = vadd.f32 %v2812_v45, %v3674_v38  ;;  %v3694_v49 = vsel %vm1253_vm2, %v1093_v42, -1e+30  ;;  %v2119_v54 = vsel %vm2118_vm1, %v1093_v42, 0.0  ;;  %v3796_v42 = vpop.permute.xlu1 %1712 }
 0x289   : > { %v1102_v47 = vpop.f32.mrf.mxu0  ;;  %vm1801_vm5 = vcmp.eq.s32.totalorder %v3669_v37, %v3796_v42 }
 0x28a   : > { %v3690_v48 = vsel %vm1253_vm2, %v1108_v46, -1e+30  ;;  %v1103_v52 = vadd.f32 %v3674_v38, %v1102_v47  ;;  %v2122_v53 = vsel %vm2118_vm1, %v1108_v46, 0.0 }
 0x28b   : > { %1292 = vmax.xlane.f32.xlu1 %v3690_v48  ;;  %1286 = vmax.xlane.f32.xlu0 %v3694_v49  ;;  %v2815_v50 = vpop.f32.mrf.mxu0 }
 0x28c   : > { %v1118_v58 = vadd.f32 %v2815_v50, %v3674_v38  ;;  %v3707_v60 = vsel %vm1253_vm2, %v1103_v52, -1e+30  ;;  %v2121_v61 = vsel %vm2118_vm1, %v1103_v52, 0.0 }
 0x28d   : > { %v1112_v51 = vpop.f32.mrf.mxu0 }
 0x28e   : > { %v1113_v59 = vadd.f32 %v3674_v38, %v1112_v51  ;;  %v3714_v0 = vsel %vm1253_vm2, %v1118_v58, -1e+30  ;;  %v2124_v7 = vsel %vm2118_vm1, %v1118_v58, 0.0 }
 0x28f   : > { %2157 = vadd.xlane.f32.xlu1 %v2122_v53  ;;  %2151 = vadd.xlane.f32.xlu0 %v2119_v54  ;;  %v2818_v55 = vpop.f32.mrf.mxu0 }
 0x290   : > { %v3718_v1 = vsel %vm1253_vm2, %v1113_v59, -1e+30  ;;  %v1128_v5 = vadd.f32 %v2818_v55, %v3674_v38  ;;  %v2123_v8 = vsel %vm2118_vm1, %v1113_v59, 0.0 }
 0x291   : > { %v1122_v57 = vpop.f32.mrf.mxu0 }
 0x292   : > { %v1123_v6 = vadd.f32 %v3674_v38, %v1122_v57  ;;  %v3730_v11 = vsel %vm1253_vm2, %v1128_v5, -1e+30  ;;  %v2126_v18 = vsel %vm2118_vm1, %v1128_v5, 0.0 }
 0x293   : > { %1290 = vmax.xlane.f32.xlu1 %v3707_v60  ;;  %2155 = vadd.xlane.f32.xlu0 %v2121_v61  ;;  %v2821_v62 = vpop.f32.mrf.mxu0 }
 0x294   : > { %v3734_v12 = vsel %vm1253_vm2, %v1123_v6, -1e+30  ;;  %v1138_v15 = vadd.f32 %v2821_v62, %v3674_v38  ;;  %v2125_v19 = vsel %vm2118_vm1, %v1123_v6, 0.0 }
 0x295   : > { %v1132_v63 = vpop.f32.mrf.mxu0 }
 0x296   : > { %v1133_v17 = vadd.f32 %v3674_v38, %v1132_v63  ;;  %v3753_v22 = vsel %vm1253_vm2, %v1138_v15, -1e+30  ;;  %v2128_v33 = vsel %vm2118_vm1, %v1138_v15, 0.0 }
 0x297   : > { %1296 = vmax.xlane.f32.xlu1 %v3714_v0  ;;  %1294 = vmax.xlane.f32.xlu0 %v3718_v1  ;;  %v2824_v2 = vpop.f32.mrf.mxu0 }
 0x298   : > { %v3759_v25 = vsel %vm1253_vm2, %v1133_v17, -1e+30  ;;  %v1148_v32 = vadd.f32 %v2824_v2, %v3674_v38  ;;  %v2127_v34 = vsel %vm2118_vm1, %v1133_v17, 0.0 }
 0x299   : > { %v1142_v3 = vpop.f32.mrf.mxu0 }
 0x29a   : > { %v1143_v36 = vadd.f32 %v3674_v38, %v1142_v3  ;;  %v3809_v47 = vsel %vm1253_vm2, %v1148_v32, -1e+30  ;;  %v2130_v62 = vsel %vm2118_vm1, %v1148_v32, 0.0  ;;  %v3840_v3 = vpop.permute.xlu1 %1715 }
 0x29b   : > { %2161 = vadd.xlane.f32.xlu1 %v2124_v7  ;;  %2159 = vadd.xlane.f32.xlu0 %v2123_v8  ;;  %v2827_v9 = vpop.f32.mrf.mxu0  ;;  %vm1802_vm8 = vcmp.eq.s32.totalorder %v3669_v37, %v3840_v3 }
 0x29c   : > { %v3813_v51 = vsel %vm1253_vm2, %v1143_v36, -1e+30  ;;  %v1158_v61 = vadd.f32 %v2827_v9, %v3674_v38  ;;  %v2129_v63 = vsel %vm2118_vm1, %v1143_v36, 0.0 }
 0x29d   : > { %v1152_v10 = vpop.f32.mrf.mxu0 }
 0x29e   : > { %v1153_v5 = vadd.f32 %v3674_v38, %v1152_v10  ;;  %v2132_v36 = vsel %vm2118_vm1, %v1158_v61, 0.0 }
 0x29f   : > { %1300 = vmax.xlane.f32.xlu1 %v3730_v11  ;;  %1298 = vmax.xlane.f32.xlu0 %v3734_v12  ;;  %v3738_v13 = vpop.f32.mrf.mxu0 }
 0x2a1   : > { %v3743_v16 = vpop.f32.mrf.mxu0 }
 0x2a3   : > { %2165 = vadd.xlane.f32.xlu1 %v2126_v18  ;;  %2163 = vadd.xlane.f32.xlu0 %v2125_v19  ;;  %v2833_v20 = vpop.f32.mrf.mxu0  ;;  %v3863_v18 = vsel %vm1253_vm2, %v1158_v61, -1e+30 }
 0x2a4   : > { %v1178_v21 = vadd.f32 %v2833_v20, %v3674_v38  ;;  %v3867_v20 = vsel %vm1253_vm2, %v1153_v5, -1e+30 }
 0x2a5   : > { %v1172_v23 = vpop.f32.mrf.mxu0 }
 0x2a6   : > { %v1173_v56 = vadd.f32 %v3674_v38, %v1172_v23  ;;  %v3764_v26 = vsel %vm1253_vm2, %v1178_v21, -1e+30  ;;  %v3768_v27 = vsel %vm2118_vm1, %v1178_v21, 0.0 }
 0x2a7   : > { %1304 = vmax.xlane.f32.xlu1 %v3753_v22  ;;  %1302 = vmax.xlane.f32.xlu0 %v3759_v25  ;;  %v2836_v28 = vpop.f32.mrf.mxu0 }
 0x2a8   : > { %v1188_v29 = vadd.f32 %v2836_v28, %v3674_v38  ;;  %v3775_v30 = vsel %vm1253_vm2, %v1173_v56, -1e+30  ;;  %v3779_v31 = vsel %vm2118_vm1, %v1173_v56, 0.0 }
 0x2a9   : > { %v1182_v35 = vpop.f32.mrf.mxu0 }
 0x2aa   : > { %v1183_v4 = vadd.f32 %v3674_v38, %v1182_v35  ;;  %v3790_v39 = vsel %vm1253_vm2, %v1188_v29, -1e+30  ;;  %v3794_v40 = vsel %vm2118_vm1, %v1188_v29, 0.0  ;;  %v3880_v29 = vpop.permute.xlu1 %1718  ;;  %v1168_v35 = vadd.f32 %v3738_v13, %v3674_v38 }
 0x2ab   : > { %2169 = vadd.xlane.f32.xlu1 %v2128_v33  ;;  %2167 = vadd.xlane.f32.xlu0 %v2127_v34  ;;  %v2839_v41 = vpop.f32.mrf.mxu0  ;;  %vm1803_vm7 = vcmp.eq.s32.totalorder %v3669_v37, %v3880_v29 }
 0x2ac   : > { %v1198_v43 = vadd.f32 %v2839_v41, %v3674_v38  ;;  %v3801_v45 = vsel %vm1253_vm2, %v1183_v4, -1e+30  ;;  %v3805_v46 = vsel %vm2118_vm1, %v1183_v4, 0.0  ;;  %v2131_v4 = vsel %vm2118_vm1, %v1153_v5, 0.0 }
 0x2ad   : > { %v1192_v50 = vpop.f32.mrf.mxu0 }
 0x2ae   : > { %v1193_v52 = vadd.f32 %v3674_v38, %v1192_v50  ;;  %v3818_v53 = vsel %vm1253_vm2, %v1198_v43, -1e+30  ;;  %v3822_v54 = vsel %vm2118_vm1, %v1198_v43, 0.0  ;;  %v1163_v43 = vadd.f32 %v3674_v38, %v3743_v16 }
 0x2af   : > { %1308 = vmax.xlane.f32.xlu1 %v3809_v47  ;;  %1306 = vmax.xlane.f32.xlu0 %v3813_v51  ;;  %v2842_v55 = vpop.f32.mrf.mxu0 }
 0x2b0   : > { %v1208_v57 = vadd.f32 %v2842_v55, %v3674_v38  ;;  %v3829_v58 = vsel %vm1253_vm2, %v1193_v52, -1e+30  ;;  %v3833_v59 = vsel %vm2118_vm1, %v1193_v52, 0.0  ;;  %v3923_v5 = vsel %vm1253_vm2, %v1163_v43, -1e+30 }
 0x2b1   : > { %v1202_v2 = vpop.f32.mrf.mxu0 }
 0x2b2   : > { %v1203_v6 = vadd.f32 %v3674_v38, %v1202_v2  ;;  %v3846_v7 = vsel %vm1253_vm2, %v1208_v57, -1e+30  ;;  %v3850_v8 = vsel %vm2118_vm1, %v1208_v57, 0.0  ;;  %v3919_v2 = vpop.permute.xlu1 %1721 }
 0x2b3   : > { %2173 = vadd.xlane.f32.xlu1 %v2130_v62  ;;  %2171 = vadd.xlane.f32.xlu0 %v2129_v63  ;;  %v2845_v9 = vpop.f32.mrf.mxu0  ;;  %v3917_v62 = vsel %vm1253_vm2, %v1168_v35, -1e+30  ;;  %vm1804_vm10 = vcmp.eq.s32.totalorder %v3669_v37, %v3919_v2 }
 0x2b4   : > { %v1218_v15 = vadd.f32 %v2845_v9, %v3674_v38  ;;  %v3855_v17 = vsel %vm1253_vm2, %v1203_v6, -1e+30  ;;  %v3859_v10 = vsel %vm2118_vm1, %v1203_v6, 0.0 }
 0x2b5   : > { %v1212_v19 = vpop.f32.mrf.mxu0 }
 0x2b6   : > { %v1213_v21 = vadd.f32 %v3674_v38, %v1212_v19  ;;  %v3872_v23 = vsel %vm1253_vm2, %v1218_v15, -1e+30  ;;  %v3876_v56 = vsel %vm2118_vm1, %v1218_v15, 0.0 }
 0x2b7   : > { %1312 = vmax.xlane.f32.xlu1 %v3863_v18  ;;  %1310 = vmax.xlane.f32.xlu0 %v3867_v20  ;;  %v2848_v28 = vpop.f32.mrf.mxu0 }
 0x2b8   : > { %v1228_v32 = vadd.f32 %v2848_v28, %v3674_v38  ;;  %v3885_v33 = vsel %vm1253_vm2, %v1213_v21, -1e+30  ;;  %v3889_v34 = vsel %vm2118_vm1, %v1213_v21, 0.0 }
 0x2b9   : > { %v1222_v41 = vpop.f32.mrf.mxu0 }
 0x2ba   : > { %v1223_v50 = vadd.f32 %v3674_v38, %v1222_v41  ;;  %v3902_v52 = vsel %vm1253_vm2, %v1228_v32, -1e+30  ;;  %v3906_v55 = vsel %vm2118_vm1, %v1228_v32, 0.0  ;;  %v2133_v41 = vsel %vm2118_vm1, %v1163_v43, 0.0 }
 0x2bb   : > { %2177 = vadd.xlane.f32.xlu1 %v2132_v36  ;;  %2175 = vadd.xlane.f32.xlu0 %v2131_v4  ;;  %v2851_v13 = vpop.f32.mrf.mxu0  ;;  %v2134_v36 = vsel %vm2118_vm1, %v1168_v35, 0.0 }
 0x2bc   : > { %v1238_v57 = vadd.f32 %v2851_v13, %v3674_v38  ;;  %v3911_v61 = vsel %vm1253_vm2, %v1223_v50, -1e+30  ;;  %v2145_v16 = vsel %vm2118_vm1, %v1223_v50, 0.0 }
 0x2bd   : > { %v1232_v63 = vpop.f32.mrf.mxu0 }
 0x2be   : > { %v1233_v6 = vadd.f32 %v3674_v38, %v1232_v63  ;;  %v3928_v9 = vsel %vm1253_vm2, %v1238_v57, -1e+30  ;;  %v2148_v15 = vsel %vm2118_vm1, %v1238_v57, 0.0  ;;  %v3954_v63 = vpop.permute.xlu1 %1724 }
 0x2bf   : > { %1316 = vmax.xlane.f32.xlu1 %v3917_v62  ;;  %1314 = vmax.xlane.f32.xlu0 %v3923_v5  ;;  %v2854_v19 = vpop.f32.mrf.mxu0  ;;  %vm1805_vm9 = vcmp.eq.s32.totalorder %v3669_v37, %v3954_v63 }
 0x2c0   : > { %v1248_v21 = vadd.f32 %v2854_v19, %v3674_v38  ;;  %v3937_v28 = vsel %vm1253_vm2, %v1233_v6, -1e+30  ;;  %v2147_v32 = vsel %vm2118_vm1, %v1233_v6, 0.0  ;;  %v3956_v6 = vpop.permute.xlu0 %1703 }
 0x2c1   : > { %v1242_v4 = vpop.f32.mrf.mxu0  ;;  %vm1798_vm4 = vcmp.eq.s32.totalorder %v3669_v37, %v3956_v6 }
 0x2c2   : > { %v1243_v50 = vadd.f32 %v3674_v38, %v1242_v4  ;;  %v3948_v13 = vsel %vm1253_vm2, %v1248_v21, -1e+30  ;;  %v3952_v57 = vsel %vm2118_vm1, %v1248_v21, 0.0  ;;  %v3968_v43 = vpop.permute.xlu1 %1727 }
 0x2c3   : > { %4883 = vst [vmem:[#allocation5_spill] sm:$0xff] %v3952_v57  ;;  %2181 = vadd.xlane.f32.xlu1 %v2134_v36  ;;  %2179 = vadd.xlane.f32.xlu0 %v2133_v41  ;;  %vm1806_vm12 = vcmp.eq.s32.totalorder %v3669_v37, %v3968_v43 }
 0x2c4   : > { %v3960_v35 = vsel %vm1253_vm2, %v1243_v50, -1e+30  ;;  %v3964_v38 = vsel %vm2118_vm1, %v1243_v50, 0.0  ;;  %v3970_v19 = vpop.permute.xlu0 %1730 }
 0x2c5   : > { %4884 = vst [vmem:[#allocation6_spill] sm:$0xff] %v3964_v38  ;;  %vm1807_vm11 = vcmp.eq.s32.totalorder %v3669_v37, %v3970_v19 }
 0x2c6   : > { %v3976_v21 = vpop.permute.xlu1 %1733 }
 0x2c7   : > { %1320 = vmax.xlane.f32.xlu1 %v3764_v26  ;;  %1318 = vmax.xlane.f32.xlu0 %v3775_v30  ;;  %vm1808_vm14 = vcmp.eq.s32.totalorder %v3669_v37, %v3976_v21 }
 0x2c8   : > { %v3978_v36 = vpop.permute.xlu0 %1736 }
 0x2c9   : > { %vm1809_vm13 = vcmp.eq.s32.totalorder %v3669_v37, %v3978_v36 }
 0x2ca   : > { %v3982_v4 = vpop.permute.xlu1 %1739 }
 0x2cb   : > { %2185 = vadd.xlane.f32.xlu1 %v3768_v27  ;;  %2183 = vadd.xlane.f32.xlu0 %v3779_v31  ;;  %4885 = vst [vmem:[#allocation7_spill] sm:$0xff] %v3982_v4 }
 0x2cc   : > { %v3984_v41 = vpop.permute.xlu0 %1742 }
 0x2cd   : > { %4886 = vst [vmem:[#allocation8_spill] sm:$0xff] %v3984_v41 }
 0x2ce   : > { %v3990_v27 = vpop.permute.xlu1 %1745 }
 0x2cf   : > { %1324 = vmax.xlane.f32.xlu1 %v3790_v39  ;;  %1322 = vmax.xlane.f32.xlu0 %v3801_v45  ;;  %4887 = vst [vmem:[#allocation9_spill] sm:$0xff] %v3990_v27 }
 0x2d0   : > { %v3992_v31 = vpop.permute.xlu0 %1748 }
 0x2d1   : > { %4888 = vst [vmem:[#allocation10_spill] sm:$0xff] %v3992_v31 }
 0x2d3   : > { %2189 = vadd.xlane.f32.xlu1 %v3794_v40  ;;  %2187 = vadd.xlane.f32.xlu0 %v3805_v46  ;;  %v3996_v40 = vpop.permute.xlu1 %1751 }
 0x2d4   : > { %4889 = vst [vmem:[#allocation11_spill] sm:$0xff] %v3996_v40  ;;  %v3998_v46 = vpop.permute.xlu0 %1754 }
 0x2d5   : > { %4890 = vst [vmem:[#allocation12_spill] sm:$0xff] %v3998_v46 }
 0x2d7   : > { %1328 = vmax.xlane.f32.xlu1 %v3818_v53  ;;  %1326 = vmax.xlane.f32.xlu0 %v3829_v58 }
 0x2db   : > { %2193 = vadd.xlane.f32.xlu1 %v3822_v54  ;;  %2191 = vadd.xlane.f32.xlu0 %v3833_v59  ;;  %v4004_v54 = vpop.permute.xlu1 %1757  ;;  %v4006_v59 = vpop.permute.xlu0 %1760 }
 0x2dc   : > { %4891 = vst [vmem:[#allocation13_spill] sm:$0xff] %v4004_v54  ;;  %4892 = vst [vmem:[#allocation14_spill] sm:$0xff] %v4006_v59 }
 0x2df   : > { %1332 = vmax.xlane.f32.xlu1 %v3846_v7  ;;  %1330 = vmax.xlane.f32.xlu0 %v3855_v17  ;;  %v4010_v50 = vpop.permute.xlu1 %1763  ;;  %v4012_v38 = vpop.permute.xlu0 %1766 }
 0x2e0   : > { %4893 = vst [vmem:[#allocation15_spill] sm:$0xff] %v4010_v50  ;;  %4894 = vst [vmem:[#allocation16_spill] sm:$0xff] %v4012_v38 }
 0x2e3   : > { %2197 = vadd.xlane.f32.xlu1 %v3850_v8  ;;  %2195 = vadd.xlane.f32.xlu0 %v3859_v10  ;;  %v4017_v8 = vpop.permute.xlu1 %1769  ;;  %v4019_v10 = vpop.permute.xlu0 %1772 }
 0x2e4   : > { %4895 = vst [vmem:[#allocation17_spill] sm:$0xff] %v4017_v8  ;;  %4896 = vst [vmem:[#allocation18_spill] sm:$0xff] %v4019_v10 }
 0x2e7   : > { %1336 = vmax.xlane.f32.xlu1 %v3872_v23  ;;  %1334 = vmax.xlane.f32.xlu0 %v3885_v33 }
 0x2eb   : > { %2201 = vadd.xlane.f32.xlu1 %v3876_v56  ;;  %2199 = vadd.xlane.f32.xlu0 %v3889_v34  ;;  %v4023_v56 = vpop.permute.xlu1 %1775  ;;  %v4025_v34 = vpop.permute.xlu0 %1778 }
 0x2ec   : > { %4897 = vst [vmem:[#allocation19_spill] sm:$0xff] %v4023_v56  ;;  %4898 = vst [vmem:[#allocation20_spill] sm:$0xff] %v4025_v34 }
 0x2ef   : > { %1340 = vmax.xlane.f32.xlu1 %v3902_v52  ;;  %1338 = vmax.xlane.f32.xlu0 %v3911_v61 }
 0x2f3   : > { %2205 = vadd.xlane.f32.xlu1 %v3906_v55  ;;  %2203 = vadd.xlane.f32.xlu0 %v2145_v16  ;;  %v4029_v55 = vpop.permute.xlu1 %1781  ;;  %v4031_v16 = vpop.permute.xlu0 %1784 }
 0x2f4   : > { %4899 = vst [vmem:[#allocation21_spill] sm:$0xff] %v4029_v55  ;;  %4900 = vst [vmem:[#allocation22_spill] sm:$0xff] %v4031_v16 }
 0x2f7   : > { %1344 = vmax.xlane.f32.xlu1 %v3928_v9  ;;  %1342 = vmax.xlane.f32.xlu0 %v3937_v28  ;;  %v4033_v57 = vpop.permute.xlu1 %1787  ;;  %v4035_v8 = vpop.permute.xlu0 %1790 }
 0x2f8   : > { %4901 = vst [vmem:[#allocation23_spill] sm:$0xff] %v4033_v57  ;;  %4902 = vst [vmem:[#allocation24_spill] sm:$0xff] %v4035_v8 }
 0x2fb   : > { %2209 = vadd.xlane.f32.xlu1 %v2148_v15  ;;  %2207 = vadd.xlane.f32.xlu0 %v2147_v32  ;;  %v4037_v10 = vpop.permute.xlu1 %1793  ;;  %v4039_v50 = vpop.permute.xlu0 %1796 }
 0x2fc   : > { %4903 = vst [vmem:[#allocation25_spill] sm:$0xff] %v4037_v10  ;;  %4904 = vst [vmem:[#allocation26_spill] sm:$0xff] %v4039_v50 }
 0x2ff   : > { %1348 = vmax.xlane.f32.xlu1 %v3948_v13  ;;  %1346 = vmax.xlane.f32.xlu0 %v3960_v35 }
 0x310   : > { %v4041_v56 = vpop.xlane.xlu1 %2153  ;;  %v1289_v15 = vpop.xlane.xlu0 %1288 }
 0x311   : > { %4905 = vst [vmem:[#allocation27_spill] sm:$0xff] %v4041_v56  ;;  %v4044_v32 = vsub.f32 %v3684_v44, %v1289_v15 }
 0x313   : > { %v1384_v34 = vmul.f32 1.442695, %v4044_v32 }
 0x314   : > { %v1293_v38 = vpop.xlane.xlu1 %1292  ;;  %v1287_v55 = vpop.xlane.xlu0 %1286 }
 0x315   : > { %3030 = vpow2.f32 %v1384_v34  ;;  %v4048_v16 = vsub.f32 %v3690_v48, %v1293_v38  ;;  %v4051_v57 = vsub.f32 %v3694_v49, %v1287_v55 }
 0x317   : > { %v1388_v10 = vmul.f32 1.442695, %v4048_v16  ;;  %v1382_v50 = vmul.f32 1.442695, %v4051_v57 }
 0x318   : > { %v4055_v56 = vpop.xlane.xlu1 %2157  ;;  %v4057_v8 = vpop.xlane.xlu0 %2151 }
 0x319   : > { %4906 = vst [vmem:[#allocation28_spill] sm:$0xff] %v4055_v56  ;;  %4907 = vst [vmem:[#allocation29_spill] sm:$0xff] %v4057_v8  ;;  %3032 = vpow2.f32 %v1388_v10 }
 0x31a   : > { %3034 = vpow2.f32 %v1382_v50 }
 0x31c   : > { %v1291_v44 = vpop.xlane.xlu1 %1290  ;;  %v4059_v15 = vpop.xlane.xlu0 %2155 }
 0x31d   : > { %4908 = vst [vmem:[#allocation30_spill] sm:$0xff] %v4059_v15  ;;  %v4062_v34 = vsub.f32 %v3707_v60, %v1291_v44 }
 0x31f   : > { %v1386_v48 = vmul.f32 1.442695, %v4062_v34 }
 0x320   : > { %v1297_v49 = vpop.xlane.xlu1 %1296  ;;  %v1295_v38 = vpop.xlane.xlu0 %1294 }
 0x321   : > { %3036 = vpow2.f32 %v1386_v48  ;;  %v4066_v55 = vsub.f32 %v3714_v0, %v1297_v49  ;;  %v4069_v56 = vsub.f32 %v3718_v1, %v1295_v38 }
 0x322   : > { %v4071_v8 = vpop.eup %3030 }
 0x323   : > { %v1392_v50 = vmul.f32 1.442695, %v4066_v55  ;;  %v1390_v10 = vmul.f32 1.442695, %v4069_v56  ;;  %1448 = vadd.xlane.f32.xlu1 %v4071_v8 }
 0x324   : > { %v4076_v60 = vpop.xlane.xlu1 %2161  ;;  %v4078_v44 = vpop.xlane.xlu0 %2159 }
 0x325   : > { %4909 = vst [vmem:[#allocation31_spill] sm:$0xff] %v4076_v60  ;;  %4910 = vst [vmem:[#allocation32_spill] sm:$0xff] %v4078_v44  ;;  %3038 = vpow2.f32 %v1392_v50 }
 0x326   : > { %v4080_v48 = vpop.eup %3032  ;;  %3040 = vpow2.f32 %v1390_v10 }
 0x327   : > { %v4082_v0 = vpop.eup %3034  ;;  %1452 = vadd.xlane.f32.xlu1 %v4080_v48 }
 0x328   : > { %1446 = vadd.xlane.f32.xlu0 %v4082_v0  ;;  %v1301_v1 = vpop.xlane.xlu1 %1300  ;;  %v1299_v49 = vpop.xlane.xlu0 %1298 }
 0x329   : > { %v4087_v38 = vsub.f32 %v3730_v11, %v1301_v1  ;;  %v4090_v15 = vsub.f32 %v3734_v12, %v1299_v49 }
 0x32b   : > { %v1396_v44 = vmul.f32 1.442695, %v4087_v38  ;;  %v1394_v50 = vmul.f32 1.442695, %v4090_v15 }
 0x32c   : > { %v4094_v60 = vpop.xlane.xlu1 %2165  ;;  %v4096_v10 = vpop.xlane.xlu0 %2163 }
 0x32d   : > { %4911 = vst [vmem:[#allocation33_spill] sm:$0xff] %v4094_v60  ;;  %4912 = vst [vmem:[#allocation34_spill] sm:$0xff] %v4096_v10  ;;  %3042 = vpow2.f32 %v1396_v44 }
 0x32e   : > { %v4098_v54 = vpop.eup %3036  ;;  %3044 = vpow2.f32 %v1394_v50 }
 0x32f   : > { %1450 = vadd.xlane.f32.xlu0 %v4098_v54 }
 0x330   : > { %v1305_v59 = vpop.xlane.xlu1 %1304  ;;  %v1303_v11 = vpop.xlane.xlu0 %1302 }
 0x331   : > { %v4102_v1 = vsub.f32 %v3753_v22, %v1305_v59  ;;  %v4105_v12 = vsub.f32 %v3759_v25, %v1303_v11 }
 0x332   : > { %v4107_v49 = vpop.eup %3038 }
 0x333   : > { %v4109_v40 = vpop.eup %3040  ;;  %v1400_v10 = vmul.f32 1.442695, %v4102_v1  ;;  %v1398_v44 = vmul.f32 1.442695, %v4105_v12  ;;  %1456 = vadd.xlane.f32.xlu1 %v4107_v49 }
 0x334   : > { %1454 = vadd.xlane.f32.xlu0 %v4109_v40  ;;  %v4115_v50 = vpop.xlane.xlu1 %2169  ;;  %v4117_v60 = vpop.xlane.xlu0 %2167 }
 0x335   : > { %4913 = vst [vmem:[#allocation35_spill] sm:$0xff] %v4115_v50  ;;  %4914 = vst [vmem:[#allocation36_spill] sm:$0xff] %v4117_v60  ;;  %3046 = vpow2.f32 %v1400_v10 }
 0x336   : > { %3048 = vpow2.f32 %v1398_v44 }
 0x338   : > { %v1309_v22 = vpop.xlane.xlu1 %1308  ;;  %v1307_v25 = vpop.xlane.xlu0 %1306 }
 0x339   : > { %v4120_v59 = vsub.f32 %v3809_v47, %v1309_v22  ;;  %v4123_v11 = vsub.f32 %v3813_v51, %v1307_v25 }
 0x33a   : > { %v4125_v46 = vpop.eup %3042 }
 0x33b   : > { %v4127_v27 = vpop.eup %3044  ;;  %v1404_v31 = vmul.f32 1.442695, %v4120_v59  ;;  %v1402_v50 = vmul.f32 1.442695, %v4123_v11  ;;  %1460 = vadd.xlane.f32.xlu1 %v4125_v46 }
 0x33c   : > { %1458 = vadd.xlane.f32.xlu0 %v4127_v27  ;;  %v4133_v10 = vpop.xlane.xlu1 %2173  ;;  %v4135_v44 = vpop.xlane.xlu0 %2171 }
 0x33d   : > { %4915 = vst [vmem:[#allocation37_spill] sm:$0xff] %v4133_v10  ;;  %4916 = vst [vmem:[#allocation38_spill] sm:$0xff] %v4135_v44  ;;  %3050 = vpow2.f32 %v1404_v31 }
 0x33e   : > { %3052 = vpow2.f32 %v1402_v50 }
 0x340   : > { %v1313_v47 = vpop.xlane.xlu1 %1312  ;;  %v1311_v51 = vpop.xlane.xlu0 %1310 }
 0x341   : > { %v4138_v22 = vsub.f32 %v3863_v18, %v1313_v47  ;;  %v4141_v25 = vsub.f32 %v3867_v20, %v1311_v51 }
 0x342   : > { %v4143_v60 = vpop.eup %3046 }
 0x343   : > { %4917 = vst [vmem:[#allocation39_spill] sm:$0xff] %v4138_v22  ;;  %4918 = vst [vmem:[#allocation40_spill] sm:$0xff] %v4141_v25  ;;  %v4145_v4 = vpop.eup %3048  ;;  %v1408_v41 = vmul.f32 1.442695, %v4138_v22  ;;  %v1406_v10 = vmul.f32 1.442695, %v4141_v25  ;;  %1464 = vadd.xlane.f32.xlu1 %v4143_v60 }
 0x344   : > { %1462 = vadd.xlane.f32.xlu0 %v4145_v4  ;;  %v4151_v31 = vpop.xlane.xlu1 %2177  ;;  %v4153_v50 = vpop.xlane.xlu0 %2175 }
 0x345   : > { %4919 = vst [vmem:[#allocation41_spill] sm:$0xff] %v4151_v31  ;;  %4920 = vst [vmem:[#allocation42_spill] sm:$0xff] %v4153_v50  ;;  %3054 = vpow2.f32 %v1408_v41 }
 0x346   : > { %3056 = vpow2.f32 %v1406_v10 }
 0x348   : > { %v1317_v18 = vpop.xlane.xlu1 %1316  ;;  %v1315_v20 = vpop.xlane.xlu0 %1314 }
 0x349   : > { %v4156_v47 = vsub.f32 %v3917_v62, %v1317_v18  ;;  %v4159_v51 = vsub.f32 %v3923_v5, %v1315_v20 }
 0x34a   : > { %v4161_v44 = vpop.eup %3050 }
 0x34b   : > { %4921 = vst [vmem:[#allocation43_spill] sm:$0xff] %v4156_v47  ;;  %4922 = vst [vmem:[#allocation44_spill] sm:$0xff] %v4159_v51  ;;  %v4163_v25 = vpop.eup %3052  ;;  %v1412_v22 = vmul.f32 1.442695, %v4156_v47  ;;  %v1410_v31 = vmul.f32 1.442695, %v4159_v51  ;;  %1468 = vadd.xlane.f32.xlu1 %v4161_v44 }
 0x34c   : > { %1466 = vadd.xlane.f32.xlu0 %v4163_v25  ;;  %v4169_v41 = vpop.xlane.xlu1 %2181  ;;  %v4171_v10 = vpop.xlane.xlu0 %2179 }
 0x34d   : > { %4923 = vst [vmem:[#allocation45_spill] sm:$0xff] %v4169_v41  ;;  %4924 = vst [vmem:[#allocation46_spill] sm:$0xff] %v4171_v10  ;;  %3058 = vpow2.f32 %v1412_v22 }
 0x34e   : > { %3060 = vpow2.f32 %v1410_v31 }
 0x350   : > { %v1321_v62 = vpop.xlane.xlu1 %1320  ;;  %v1319_v5 = vpop.xlane.xlu0 %1318 }
 0x351   : > { %v4174_v18 = vsub.f32 %v3764_v26, %v1321_v62  ;;  %v4177_v20 = vsub.f32 %v3775_v30, %v1319_v5 }
 0x352   : > { %v4179_v50 = vpop.eup %3054 }
 0x353   : > { %4925 = vst [vmem:[#allocation47_spill] sm:$0xff] %v4174_v18  ;;  %4926 = vst [vmem:[#allocation48_spill] sm:$0xff] %v4177_v20  ;;  %v4181_v51 = vpop.eup %3056  ;;  %v1416_v47 = vmul.f32 1.442695, %v4174_v18  ;;  %v1414_v41 = vmul.f32 1.442695, %v4177_v20  ;;  %1472 = vadd.xlane.f32.xlu1 %v4179_v50 }
 0x354   : > { %1470 = vadd.xlane.f32.xlu0 %v4181_v51  ;;  %v4187_v22 = vpop.xlane.xlu1 %2185  ;;  %v4189_v31 = vpop.xlane.xlu0 %2183 }
 0x355   : > { %4927 = vst [vmem:[#allocation49_spill] sm:$0xff] %v4187_v22  ;;  %4928 = vst [vmem:[#allocation50_spill] sm:$0xff] %v4189_v31  ;;  %3062 = vpow2.f32 %v1416_v47 }
 0x356   : > { %3064 = vpow2.f32 %v1414_v41 }
 0x358   : > { %v1325_v26 = vpop.xlane.xlu1 %1324  ;;  %v1323_v30 = vpop.xlane.xlu0 %1322 }
 0x359   : > { %v4192_v62 = vsub.f32 %v3790_v39, %v1325_v26  ;;  %v4195_v5 = vsub.f32 %v3801_v45, %v1323_v30 }
 0x35a   : > { %v4197_v10 = vpop.eup %3058 }
 0x35b   : > { %4929 = vst [vmem:[#allocation51_spill] sm:$0xff] %v4192_v62  ;;  %4930 = vst [vmem:[#allocation52_spill] sm:$0xff] %v4195_v5  ;;  %v4199_v20 = vpop.eup %3060  ;;  %v1420_v18 = vmul.f32 1.442695, %v4192_v62  ;;  %v1418_v22 = vmul.f32 1.442695, %v4195_v5  ;;  %1476 = vadd.xlane.f32.xlu1 %v4197_v10 }
 0x35c   : > { %1474 = vadd.xlane.f32.xlu0 %v4199_v20  ;;  %v4205_v47 = vpop.xlane.xlu1 %2189  ;;  %v4207_v41 = vpop.xlane.xlu0 %2187 }
 0x35d   : > { %4931 = vst [vmem:[#allocation53_spill] sm:$0xff] %v4205_v47  ;;  %4932 = vst [vmem:[#allocation54_spill] sm:$0xff] %v4207_v41  ;;  %3066 = vpow2.f32 %v1420_v18 }
 0x35e   : > { %3068 = vpow2.f32 %v1418_v22 }
 0x360   : > { %v1329_v39 = vpop.xlane.xlu1 %1328  ;;  %v1327_v45 = vpop.xlane.xlu0 %1326 }
 0x361   : > { %v4210_v26 = vsub.f32 %v3818_v53, %v1329_v39  ;;  %v4213_v30 = vsub.f32 %v3829_v58, %v1327_v45 }
 0x362   : > { %v4215_v31 = vpop.eup %3062 }
 0x363   : > { %4933 = vst [vmem:[#allocation55_spill] sm:$0xff] %v4210_v26  ;;  %4934 = vst [vmem:[#allocation56_spill] sm:$0xff] %v4213_v30  ;;  %v4217_v5 = vpop.eup %3064  ;;  %v1424_v62 = vmul.f32 1.442695, %v4210_v26  ;;  %v1422_v47 = vmul.f32 1.442695, %v4213_v30  ;;  %1480 = vadd.xlane.f32.xlu1 %v4215_v31 }
 0x364   : > { %1478 = vadd.xlane.f32.xlu0 %v4217_v5  ;;  %v4223_v18 = vpop.xlane.xlu1 %2193  ;;  %v4225_v22 = vpop.xlane.xlu0 %2191 }
 0x365   : > { %4935 = vst [vmem:[#allocation57_spill] sm:$0xff] %v4223_v18  ;;  %4936 = vst [vmem:[#allocation58_spill] sm:$0xff] %v4225_v22  ;;  %3070 = vpow2.f32 %v1424_v62 }
 0x366   : > { %3072 = vpow2.f32 %v1422_v47 }
 0x368   : > { %v1333_v53 = vpop.xlane.xlu1 %1332  ;;  %v1331_v58 = vpop.xlane.xlu0 %1330 }
 0x369   : > { %v4228_v39 = vsub.f32 %v3846_v7, %v1333_v53  ;;  %v4231_v45 = vsub.f32 %v3855_v17, %v1331_v58 }
 0x36a   : > { %v4233_v41 = vpop.eup %3066 }
 0x36b   : > { %4937 = vst [vmem:[#allocation59_spill] sm:$0xff] %v4228_v39  ;;  %4938 = vst [vmem:[#allocation60_spill] sm:$0xff] %v4231_v45  ;;  %v4235_v30 = vpop.eup %3068  ;;  %v1428_v26 = vmul.f32 1.442695, %v4228_v39  ;;  %v1426_v18 = vmul.f32 1.442695, %v4231_v45  ;;  %1484 = vadd.xlane.f32.xlu1 %v4233_v41 }
 0x36c   : > { %1482 = vadd.xlane.f32.xlu0 %v4235_v30  ;;  %v4241_v62 = vpop.xlane.xlu1 %2197  ;;  %v4243_v47 = vpop.xlane.xlu0 %2195 }
 0x36d   : > { %4939 = vst [vmem:[#allocation61_spill] sm:$0xff] %v4241_v62  ;;  %4940 = vst [vmem:[#allocation62_spill] sm:$0xff] %v4243_v47  ;;  %3074 = vpow2.f32 %v1428_v26 }
 0x36e   : > { %3076 = vpow2.f32 %v1426_v18 }
 0x370   : > { %v1337_v7 = vpop.xlane.xlu1 %1336  ;;  %v1335_v17 = vpop.xlane.xlu0 %1334 }
 0x371   : > { %v4246_v53 = vsub.f32 %v3872_v23, %v1337_v7  ;;  %v4249_v58 = vsub.f32 %v3885_v33, %v1335_v17 }
 0x372   : > { %v4251_v22 = vpop.eup %3070 }
 0x373   : > { %4941 = vst [vmem:[#allocation63_spill] sm:$0xff] %v4246_v53  ;;  %4942 = vst [vmem:[#allocation64_spill] sm:$0xff] %v4249_v58  ;;  %v4253_v45 = vpop.eup %3072  ;;  %v1432_v39 = vmul.f32 1.442695, %v4246_v53  ;;  %v1430_v62 = vmul.f32 1.442695, %v4249_v58  ;;  %1488 = vadd.xlane.f32.xlu1 %v4251_v22 }
 0x374   : > { %1486 = vadd.xlane.f32.xlu0 %v4253_v45  ;;  %v4259_v26 = vpop.xlane.xlu1 %2201  ;;  %v4261_v18 = vpop.xlane.xlu0 %2199 }
 0x375   : > { %4943 = vst [vmem:[#allocation65_spill] sm:$0xff] %v4259_v26  ;;  %4944 = vst [vmem:[#allocation66_spill] sm:$0xff] %v4261_v18  ;;  %3078 = vpow2.f32 %v1432_v39 }
 0x376   : > { %3080 = vpow2.f32 %v1430_v62 }
 0x378   : > { %v1341_v23 = vpop.xlane.xlu1 %1340  ;;  %v1339_v33 = vpop.xlane.xlu0 %1338 }
 0x379   : > { %v4264_v7 = vsub.f32 %v3902_v52, %v1341_v23  ;;  %v4267_v17 = vsub.f32 %v3911_v61, %v1339_v33 }
 0x37a   : > { %v4269_v47 = vpop.eup %3074 }
 0x37b   : > { %4945 = vst [vmem:[#allocation67_spill] sm:$0xff] %v4264_v7  ;;  %4946 = vst [vmem:[#allocation68_spill] sm:$0xff] %v4267_v17  ;;  %v4271_v58 = vpop.eup %3076  ;;  %v1436_v53 = vmul.f32 1.442695, %v4264_v7  ;;  %v1434_v26 = vmul.f32 1.442695, %v4267_v17  ;;  %1492 = vadd.xlane.f32.xlu1 %v4269_v47 }
 0x37c   : > { %1490 = vadd.xlane.f32.xlu0 %v4271_v58  ;;  %v4277_v39 = vpop.xlane.xlu1 %2205  ;;  %v4279_v62 = vpop.xlane.xlu0 %2203 }
 0x37d   : > { %4947 = vst [vmem:[#allocation69_spill] sm:$0xff] %v4277_v39  ;;  %4948 = vst [vmem:[#allocation70_spill] sm:$0xff] %v4279_v62  ;;  %3082 = vpow2.f32 %v1436_v53 }
 0x37e   : > { %3084 = vpow2.f32 %v1434_v26 }
 0x380   : > { %v1345_v52 = vpop.xlane.xlu1 %1344  ;;  %v1343_v61 = vpop.xlane.xlu0 %1342 }
 0x381   : > { %v4282_v23 = vsub.f32 %v3928_v9, %v1345_v52  ;;  %v4285_v33 = vsub.f32 %v3937_v28, %v1343_v61 }
 0x382   : > { %v4287_v18 = vpop.eup %3078 }
 0x383   : > { %4949 = vst [vmem:[#allocation71_spill] sm:$0xff] %v4282_v23  ;;  %4950 = vst [vmem:[#allocation72_spill] sm:$0xff] %v4285_v33  ;;  %v4289_v17 = vpop.eup %3080  ;;  %v1440_v7 = vmul.f32 1.442695, %v4282_v23  ;;  %v1438_v39 = vmul.f32 1.442695, %v4285_v33  ;;  %1496 = vadd.xlane.f32.xlu1 %v4287_v18 }
 0x384   : > { %4951 = vst [vmem:[#allocation73_spill] sm:$0xff] %v4287_v18  ;;  %4952 = vst [vmem:[#allocation74_spill] sm:$0xff] %v4289_v17  ;;  %1494 = vadd.xlane.f32.xlu0 %v4289_v17  ;;  %v4295_v53 = vpop.xlane.xlu1 %2209  ;;  %v4297_v26 = vpop.xlane.xlu0 %2207 }
 0x385   : > { %4953 = vst [vmem:[#allocation75_spill] sm:$0xff] %v4295_v53  ;;  %4954 = vst [vmem:[#allocation76_spill] sm:$0xff] %v4297_v26  ;;  %3086 = vpow2.f32 %v1440_v7 }
 0x386   : > { %3088 = vpow2.f32 %v1438_v39 }
 0x388   : > { %v1349_v9 = vpop.xlane.xlu1 %1348  ;;  %v1347_v28 = vpop.xlane.xlu0 %1346 }
 0x389   : > { %v4300_v52 = vsub.f32 %v3948_v13, %v1349_v9  ;;  %v4303_v61 = vsub.f32 %v3960_v35, %v1347_v28 }
 0x38a   : > { %v4305_v62 = vpop.eup %3082 }
 0x38b   : > { %4955 = vst [vmem:[#allocation77_spill] sm:$0xff] %v4300_v52  ;;  %4956 = vst [vmem:[#allocation78_spill] sm:$0xff] %v4303_v61  ;;  %v4307_v33 = vpop.eup %3084  ;;  %v1444_v23 = vmul.f32 1.442695, %v4300_v52  ;;  %v1442_v53 = vmul.f32 1.442695, %v4303_v61  ;;  %1500 = vadd.xlane.f32.xlu1 %v4305_v62 }
 0x38c   : > { %4957 = vst [vmem:[#allocation79_spill] sm:$0xff] %v4305_v62  ;;  %4958 = vst [vmem:[#allocation80_spill] sm:$0xff] %v4307_v33  ;;  %1498 = vadd.xlane.f32.xlu0 %v4307_v33  ;;  %v3285_v33 = vmov 0.0  }
 0x38d   : > { %3090 = vpow2.f32 %v1444_v23  ;;  %v2481_v42 = vsel %vm1801_vm5, 1.0, %v3285_v33 }
 0x38e   : > { %3092 = vpow2.f32 %v1442_v53 }
 0x392   : > { %v4313_v7 = vpop.eup %3086 }
 0x393   : > { %4959 = vst [vmem:[#allocation81_spill] sm:$0xff] %v4313_v7  ;;  %v4315_v13 = vpop.eup %3088  ;;  %1504 = vadd.xlane.f32.xlu1 %v4313_v7 }
 0x394   : > { %4960 = vst [vmem:[#allocation82_spill] sm:$0xff] %v4315_v13  ;;  %1502 = vadd.xlane.f32.xlu0 %v4315_v13 }
 0x39a   : > { %v4319_v35 = vpop.eup %3090 }
 0x39b   : > { %4961 = vst [vmem:[#allocation83_spill] sm:$0xff] %v4319_v35  ;;  %v4321_v39 = vpop.eup %3092  ;;  %1508 = vadd.xlane.f32.xlu1 %v4319_v35 }
 0x39c   : > { %4962 = vst [vmem:[#allocation84_spill] sm:$0xff] %v4321_v39  ;;  %1506 = vadd.xlane.f32.xlu0 %v4321_v39 }
 0x3ac   : > { %v1449_v9 = vpop.xlane.xlu1 %1448 }
 0x3ad   : > { %3094 = vrcp.f32 %v1449_v9 }
 0x3ae   : > { %3096 = vlog2.f32 %v1449_v9 }
 0x3b0   : > { %v1453_v23 = vpop.xlane.xlu1 %1452 }
 0x3b1   : > { %v1447_v53 = vpop.xlane.xlu0 %1446  ;;  %3098 = vlog2.f32 %v1453_v23 }
 0x3b2   : > { %3100 = vrcp.f32 %v1447_v53 }
 0x3b3   : > { %3102 = vlog2.f32 %v1447_v53  ;;  %v2479_v53 = vsel %vm1799_vm3, 1.0, %v3285_v33 }
 0x3b8   : > { %v1451_v28 = vpop.xlane.xlu0 %1450 }
 0x3b9   : > { %3104 = vlog2.f32 %v1451_v28 }
 0x3ba   : > { %v3095_v26 = vpop.eup %3094  ;;  %3106 = vrcp.f32 %v1453_v23 }
 0x3bb   : > { %v3097_v61 = vpop.eup %3096  ;;  %3108 = vrcp.f32 %v1451_v28  ;;  %v1543_v9 = vmul.f32 %v3095_v26, %v4071_v8 }
 0x3bc   : > { %v1577_v13 = vmul.f32 0.6931472, %v3097_v61  ;;  %v1457_v35 = vpop.xlane.xlu1 %1456 }
 0x3bd   : > { %v1455_v39 = vpop.xlane.xlu0 %1454  ;;  %3110 = vlog2.f32 %v1457_v35 }
 0x3be   : > { %v1639_v52 = vsub.f32 %v4044_v32, %v1577_v13  ;;  %v3099_v7 = vpop.eup %3098  ;;  %3112 = vlog2.f32 %v1455_v39  ;;  %v2478_v13 = vsel %vm1798_vm4, 1.0, %v3285_v33 }
 0x3bf   : > { %v3101_v62 = vpop.eup %3100  ;;  %v1581_v14 = vmul.f32 0.6931472, %v3099_v7  ;;  %3114 = vrcp.f32 %v1457_v35 }
 0x3c0   : > { %v1991_v17 = vmul.f32 %v1639_v52, %v1543_v9  ;;  %v1895_v23 = vmul.f32 %v2479_v53, %v1639_v52  ;;  %v3103_v18 = vpop.eup %3102  ;;  %v1542_v26 = vmul.f32 %v3101_v62, %v4082_v0  ;;  %3116 = vrcp.f32 %v1455_v39 }
 0x3c1   : > { %v1575_v61 = vmul.f32 0.6931472, %v3103_v18  ;;  %v1641_v18 = vsub.f32 %v4048_v16, %v1581_v14  ;;  %v2480_v9 = vsel %vm1800_vm6, 1.0, %v3285_v33 }
 0x3c2   : > { %2024 = vadd.xlane.f32.xlu1 %v1991_v17  ;;  %1928 = vadd.xlane.f32.xlu0 %v1895_v23 }
 0x3c3   : > { %v1638_v32 = vsub.f32 %v4051_v57, %v1575_v61  ;;  %v1897_v62 = vmul.f32 %v2481_v42, %v1641_v18 }
 0x3c4   : > { %v1461_v8 = vpop.xlane.xlu1 %1460 }
 0x3c5   : > { %v1459_v52 = vpop.xlane.xlu0 %1458  ;;  %3118 = vlog2.f32 %v1461_v8  ;;  %v1894_v28 = vmul.f32 %v2478_v13, %v1638_v32  ;;  %v1990_v6 = vmul.f32 %v1638_v32, %v1542_v26 }
 0x3c6   : > { %v3105_v17 = vpop.eup %3104  ;;  %3120 = vlog2.f32 %v1459_v52 }
 0x3c7   : > { %v3107_v7 = vpop.eup %3106  ;;  %v1579_v57 = vmul.f32 0.6931472, %v3105_v17  ;;  %1926 = vadd.xlane.f32.xlu1 %v1894_v28  ;;  %2022 = vadd.xlane.f32.xlu0 %v1990_v6  ;;  %3122 = vrcp.f32 %v1461_v8 }
 0x3c8   : > { %v3109_v0 = vpop.eup %3108  ;;  %v1545_v16 = vmul.f32 %v3107_v7, %v4080_v48  ;;  %3124 = vrcp.f32 %v1459_v52  ;;  %v2483_v48 = vsel %vm1803_vm7, 1.0, %v3285_v33 }
 0x3c9   : > { %v1640_v35 = vsub.f32 %v4062_v34, %v1579_v57  ;;  %v1544_v13 = vmul.f32 %v3109_v0, %v4098_v54  ;;  %v2482_v54 = vsel %vm1802_vm8, 1.0, %v3285_v33 }
 0x3ca   : > { %v3111_v39 = vpop.eup %3110  ;;  %v1993_v32 = vmul.f32 %v1641_v18, %v1545_v16 }
 0x3cb   : > { %v1585_v53 = vmul.f32 0.6931472, %v3111_v39  ;;  %1932 = vadd.xlane.f32.xlu1 %v1897_v62  ;;  %v1896_v23 = vmul.f32 %v2480_v9, %v1640_v35  ;;  %v3113_v14 = vpop.eup %3112  ;;  %v1992_v52 = vmul.f32 %v1640_v35, %v1544_v13 }
 0x3cc   : > { %v1465_v24 = vpop.xlane.xlu1 %1464  ;;  %v1583_v26 = vmul.f32 0.6931472, %v3113_v14  ;;  %v3115_v6 = vpop.eup %3114 }
 0x3cd   : > { %v1463_v61 = vpop.xlane.xlu0 %1462  ;;  %3126 = vlog2.f32 %v1465_v24  ;;  %1930 = vadd.xlane.f32.xlu0 %v1896_v23  ;;  %v1643_v34 = vsub.f32 %v4066_v55, %v1585_v53  ;;  %v3117_v18 = vpop.eup %3116  ;;  %v1547_v17 = vmul.f32 %v3115_v6, %v4107_v49  ;;  %v2485_v49 = vsel %vm1805_vm9, 1.0, %v3285_v33 }
 0x3ce   : > { %3128 = vlog2.f32 %v1463_v61  ;;  %v1642_v28 = vsub.f32 %v4069_v56, %v1583_v26  ;;  %v1546_v56 = vmul.f32 %v3117_v18, %v4109_v40 }
 0x3cf   : > { %2028 = vadd.xlane.f32.xlu1 %v1993_v32  ;;  %v1899_v8 = vmul.f32 %v2483_v48, %v1643_v34  ;;  %3130 = vrcp.f32 %v1465_v24  ;;  %v1995_v62 = vmul.f32 %v1643_v34, %v1547_v17 }
 0x3d0   : > { %v1898_v7 = vmul.f32 %v2482_v54, %v1642_v28  ;;  %3132 = vrcp.f32 %v1463_v61  ;;  %v1994_v9 = vmul.f32 %v1642_v28, %v1546_v56 }
 0x3d1   : > { %2026 = vadd.xlane.f32.xlu0 %v1992_v52 }
 0x3d2   : > { %v3119_v55 = vpop.eup %3118 }
 0x3d3   : > { %v1589_v3 = vmul.f32 0.6931472, %v3119_v55  ;;  %1936 = vadd.xlane.f32.xlu1 %v1899_v8  ;;  %v3121_v57 = vpop.eup %3120 }
 0x3d4   : > { %v1469_v29 = vpop.xlane.xlu1 %1468  ;;  %v1587_v0 = vmul.f32 0.6931472, %v3121_v57  ;;  %v3123_v16 = vpop.eup %3122 }
 0x3d5   : > { %v1467_v42 = vpop.xlane.xlu0 %1466  ;;  %3134 = vlog2.f32 %v1469_v29  ;;  %1934 = vadd.xlane.f32.xlu0 %v1898_v7  ;;  %v1645_v35 = vsub.f32 %v4087_v38, %v1589_v3  ;;  %v3125_v53 = vpop.eup %3124  ;;  %v2484_v38 = vsel %vm1804_vm10, 1.0, %v3285_v33  ;;  %v1549_v23 = vmul.f32 %v3123_v16, %v4125_v46 }
 0x3d6   : > { %3136 = vlog2.f32 %v1467_v42  ;;  %v1644_v40 = vsub.f32 %v4090_v15, %v1587_v0  ;;  %v1548_v15 = vmul.f32 %v3125_v53, %v4127_v27  ;;  %v2487_v46 = vsel %vm1807_vm11, 1.0, %v3285_v33 }
 0x3d7   : > { %2032 = vadd.xlane.f32.xlu1 %v1995_v62  ;;  %v1901_v39 = vmul.f32 %v2485_v49, %v1645_v35  ;;  %3138 = vrcp.f32 %v1469_v29  ;;  %v1997_v34 = vmul.f32 %v1645_v35, %v1549_v23  ;;  %v4963_v35 = vld [vmem:[#allocation8_spill] sm:$0xff] }
 0x3d8   : > { %v1900_v14 = vmul.f32 %v2484_v38, %v1644_v40  ;;  %3140 = vrcp.f32 %v1467_v42  ;;  %v1996_v8 = vmul.f32 %v1644_v40, %v1548_v15  ;;  %vm1811_vm15 = vcmp.eq.s32.totalorder %v3669_v37, %v4963_v35 }
 0x3d9   : > { %2030 = vadd.xlane.f32.xlu0 %v1994_v9 }
 0x3da   : > { %v3127_v24 = vpop.eup %3126 }
 0x3db   : > { %v1593_v2 = vmul.f32 0.6931472, %v3127_v24  ;;  %1940 = vadd.xlane.f32.xlu1 %v1901_v39  ;;  %v3129_v61 = vpop.eup %3128  ;;  %v4964_v24 = vld [vmem:[#allocation39_spill] sm:$0xff] }
 0x3dc   : > { %v1473_v63 = vpop.xlane.xlu1 %1472  ;;  %v1591_v26 = vmul.f32 0.6931472, %v3129_v61  ;;  %v3131_v52 = vpop.eup %3130 }
 0x3dd   : > { %v1471_v32 = vpop.xlane.xlu0 %1470  ;;  %3142 = vlog2.f32 %v1473_v63  ;;  %1938 = vadd.xlane.f32.xlu0 %v1900_v14  ;;  %v1647_v13 = vsub.f32 %v4102_v1, %v1593_v2  ;;  %v3133_v28 = vpop.eup %3132  ;;  %v2486_v1 = vsel %vm1806_vm12, 1.0, %v3285_v33  ;;  %v1551_v18 = vmul.f32 %v3131_v52, %v4143_v60  ;;  %v4965_v2 = vld [vmem:[#allocation7_spill] sm:$0xff]  ;;  %v4966_v14 = vld [vmem:[#allocation40_spill] sm:$0xff] }
 0x3de   : > { %3144 = vlog2.f32 %v1471_v32  ;;  %v1646_v27 = vsub.f32 %v4105_v12, %v1591_v26  ;;  %v1550_v12 = vmul.f32 %v3133_v28, %v4145_v4  ;;  %v2489_v60 = vsel %vm1809_vm13, 1.0, %v3285_v33 }
 0x3df   : > { %2036 = vadd.xlane.f32.xlu1 %v1997_v34  ;;  %v1903_v48 = vmul.f32 %v2487_v46, %v1647_v13  ;;  %3146 = vrcp.f32 %v1473_v63  ;;  %v1999_v17 = vmul.f32 %v1647_v13, %v1551_v18  ;;  %vm1810_vm0 = vcmp.eq.s32.totalorder %v3669_v37, %v4965_v2  ;;  %v4967_v34 = vld [vmem:[#allocation10_spill] sm:$0xff]  ;;  %v4969_v18 = vld [vmem:[#allocation9_spill] sm:$0xff] }
 0x3e0   : > { %v1902_v55 = vmul.f32 %v2486_v1, %v1646_v27  ;;  %3148 = vrcp.f32 %v1471_v32  ;;  %v1998_v42 = vmul.f32 %v1646_v27, %v1550_v12  ;;  %v2490_v26 = vsel %vm1810_vm0, 1.0, %v3285_v33  ;;  %v4975_v2 = vld [vmem:[#allocation14_spill] sm:$0xff] }
 0x3e1   : > { %2034 = vadd.xlane.f32.xlu0 %v1996_v8  ;;  %vm1813_vm1 = vcmp.eq.s32.totalorder %v3669_v37, %v4967_v34  ;;  %vm1812_vm2 = vcmp.eq.s32.totalorder %v3669_v37, %v4969_v18  ;;  %vm1817_vm5 = vcmp.eq.s32.totalorder %v3669_v37, %v4975_v2  ;;  %v4976_v34 = vld [vmem:[#allocation51_spill] sm:$0xff] }
 0x3e2   : > { %v3135_v6 = vpop.eup %3134 }
 0x3e3   : > { %v1597_v43 = vmul.f32 0.6931472, %v3135_v6  ;;  %1944 = vadd.xlane.f32.xlu1 %v1903_v48  ;;  %v3137_v54 = vpop.eup %3136 }
 0x3e4   : > { %v1477_v19 = vpop.xlane.xlu1 %1476  ;;  %v1595_v29 = vmul.f32 0.6931472, %v3137_v54  ;;  %v3139_v56 = vpop.eup %3138 }
 0x3e5   : > { %v1475_v3 = vpop.xlane.xlu0 %1474  ;;  %3150 = vlog2.f32 %v1477_v19  ;;  %1942 = vadd.xlane.f32.xlu0 %v1902_v55  ;;  %v1649_v7 = vsub.f32 %v4120_v59, %v1597_v43  ;;  %v3141_v0 = vpop.eup %3140  ;;  %v2488_v59 = vsel %vm1808_vm14, 1.0, %v3285_v33  ;;  %v1553_v49 = vmul.f32 %v3139_v56, %v4161_v44  ;;  %v4968_v43 = vld [vmem:[#allocation43_spill] sm:$0xff] }
 0x3e6   : > { %3152 = vlog2.f32 %v1475_v3  ;;  %v1648_v4 = vsub.f32 %v4123_v11, %v1595_v29  ;;  %v1552_v11 = vmul.f32 %v3141_v0, %v4163_v25  ;;  %v2491_v44 = vsel %vm1811_vm15, 1.0, %v3285_v33 }
 0x3e7   : > { %2040 = vadd.xlane.f32.xlu1 %v1999_v17  ;;  %v1905_v57 = vmul.f32 %v2489_v60, %v1649_v7  ;;  %3154 = vrcp.f32 %v1477_v19  ;;  %v2001_v53 = vmul.f32 %v1649_v7, %v1553_v49  ;;  %v2492_v7 = vsel %vm1812_vm2, 1.0, %v3285_v33  ;;  %v4971_v60 = vld [vmem:[#allocation12_spill] sm:$0xff] }
 0x3e8   : > { %v1904_v39 = vmul.f32 %v2488_v59, %v1648_v4  ;;  %3156 = vrcp.f32 %v1475_v3  ;;  %v2000_v23 = vmul.f32 %v1648_v4, %v1552_v11  ;;  %v4970_v3 = vld [vmem:[#allocation44_spill] sm:$0xff]  ;;  %vm1815_vm3 = vcmp.eq.s32.totalorder %v3669_v37, %v4971_v60  ;;  %v4981_v60 = vld [vmem:[#allocation15_spill] sm:$0xff] }
 0x3e9   : > { %2038 = vadd.xlane.f32.xlu0 %v1998_v42  ;;  %v4974_v11 = vld [vmem:[#allocation48_spill] sm:$0xff]  ;;  %vm1818_vm8 = vcmp.eq.s32.totalorder %v3669_v37, %v4981_v60  ;;  %v4993_v60 = vld [vmem:[#allocation74_spill] sm:$0xff] }
 0x3ea   : > { %v3143_v62 = vpop.eup %3142 }
 0x3eb   : > { %v1601_v21 = vmul.f32 0.6931472, %v3143_v62  ;;  %1948 = vadd.xlane.f32.xlu1 %v1905_v57  ;;  %v3145_v9 = vpop.eup %3144 }
 0x3ec   : > { %v1481_v36 = vpop.xlane.xlu1 %1480  ;;  %v1599_v16 = vmul.f32 0.6931472, %v3145_v9  ;;  %v3147_v61 = vpop.eup %3146 }
 0x3ed   : > { %v1479_v40 = vpop.xlane.xlu0 %1478  ;;  %3158 = vlog2.f32 %v1481_v36  ;;  %1946 = vadd.xlane.f32.xlu0 %v1904_v39  ;;  %v1651_v38 = vsub.f32 %v4964_v24, %v1601_v21  ;;  %v3149_v32 = vpop.eup %3148  ;;  %v1555_v48 = vmul.f32 %v3147_v61, %v4179_v50  ;;  %v2493_v50 = vsel %vm1813_vm1, 1.0, %v3285_v33  ;;  %v4973_v39 = vld [vmem:[#allocation11_spill] sm:$0xff] }
 0x3ee   : > { %3160 = vlog2.f32 %v1479_v40  ;;  %v1650_v25 = vsub.f32 %v4966_v14, %v1599_v16  ;;  %v1554_v28 = vmul.f32 %v3149_v32, %v4181_v51  ;;  %vm1814_vm4 = vcmp.eq.s32.totalorder %v3669_v37, %v4973_v39 }
 0x3ef   : > { %2044 = vadd.xlane.f32.xlu1 %v2001_v53  ;;  %v1907_v63 = vmul.f32 %v2491_v44, %v1651_v38  ;;  %3162 = vrcp.f32 %v1481_v36  ;;  %v2003_v1 = vmul.f32 %v1651_v38, %v1555_v48  ;;  %v4972_v36 = vld [vmem:[#allocation47_spill] sm:$0xff]  ;;  %v2494_v38 = vsel %vm1814_vm4, 1.0, %v3285_v33 }
 0x3f0   : > { %v1906_v8 = vmul.f32 %v2490_v26, %v1650_v25  ;;  %3164 = vrcp.f32 %v1479_v40  ;;  %v2002_v54 = vmul.f32 %v1650_v25, %v1554_v28  ;;  %vm2216_vm4 = vcmp.eq.s32.totalorder %v3669_v37, 1 }
 0x3f1   : > { %2042 = vadd.xlane.f32.xlu0 %v2000_v23 }
 0x3f2   : > { %v3151_v15 = vpop.eup %3150 }
 0x3f3   : > { %v1605_v13 = vmul.f32 0.6931472, %v3151_v15  ;;  %1952 = vadd.xlane.f32.xlu1 %v1907_v63  ;;  %v3153_v27 = vpop.eup %3152 }
 0x3f4   : > { %v1485_v46 = vpop.xlane.xlu1 %1484  ;;  %v1603_v6 = vmul.f32 0.6931472, %v3153_v27  ;;  %v3155_v12 = vpop.eup %3154  ;;  %v4978_v27 = vld [vmem:[#allocation52_spill] sm:$0xff] }
 0x3f5   : > { %v1483_v52 = vpop.xlane.xlu0 %1482  ;;  %3166 = vlog2.f32 %v1485_v46  ;;  %1950 = vadd.xlane.f32.xlu0 %v1906_v8  ;;  %v1653_v19 = vsub.f32 %v4968_v43, %v1605_v13  ;;  %v3157_v29 = vpop.eup %3156  ;;  %v1557_v4 = vmul.f32 %v3155_v12, %v4197_v10  ;;  %v2495_v10 = vsel %vm1815_vm3, 1.0, %v3285_v33  ;;  %v4979_v43 = vld [vmem:[#allocation16_spill] sm:$0xff] }
 0x3f6   : > { %3168 = vlog2.f32 %v1483_v52  ;;  %v1652_v51 = vsub.f32 %v4970_v3, %v1603_v6  ;;  %v1556_v59 = vmul.f32 %v3157_v29, %v4199_v20  ;;  %vm1819_vm7 = vcmp.eq.s32.totalorder %v3669_v37, %v4979_v43 }
 0x3f7   : > { %2048 = vadd.xlane.f32.xlu1 %v2003_v1  ;;  %v1909_v55 = vmul.f32 %v2493_v50, %v1653_v19  ;;  %3170 = vrcp.f32 %v1485_v46  ;;  %v2005_v21 = vmul.f32 %v1653_v19, %v1557_v4  ;;  %v4977_v46 = vld [vmem:[#allocation13_spill] sm:$0xff]  ;;  %v4982_v4 = vld [vmem:[#allocation56_spill] sm:$0xff]  ;;  %vm2217_vm3 = vcmp.eq.s32.totalorder %v3669_v37, 2 }
 0x3f8   : > { %v1908_v56 = vmul.f32 %v2492_v7, %v1652_v51  ;;  %3172 = vrcp.f32 %v1483_v52  ;;  %v2004_v40 = vmul.f32 %v1652_v51, %v1556_v59  ;;  %vm1816_vm6 = vcmp.eq.s32.totalorder %v3669_v37, %v4977_v46 }
 0x3f9   : > { %2046 = vadd.xlane.f32.xlu0 %v2002_v54  ;;  %v2496_v1 = vsel %vm1816_vm6, 1.0, %v3285_v33  ;;  %v2498_v59 = vsel %vm1818_vm8, 1.0, %v3285_v33 }
 0x3fa   : > { %v3159_v17 = vpop.eup %3158 }
 0x3fb   : > { %v1609_v57 = vmul.f32 0.6931472, %v3159_v17  ;;  %1956 = vadd.xlane.f32.xlu1 %v1909_v55  ;;  %v3161_v0 = vpop.eup %3160  ;;  %v4980_v17 = vld [vmem:[#allocation55_spill] sm:$0xff] }
 0x3fc   : > { %v1489_v42 = vpop.xlane.xlu1 %1488  ;;  %v1607_v35 = vmul.f32 0.6931472, %v3161_v0  ;;  %v3163_v16 = vpop.eup %3162 }
 0x3fd   : > { %v1487_v62 = vpop.xlane.xlu0 %1486  ;;  %3174 = vlog2.f32 %v1489_v42  ;;  %1954 = vadd.xlane.f32.xlu0 %v1908_v56  ;;  %v1655_v49 = vsub.f32 %v4972_v36, %v1609_v57  ;;  %v3165_v53 = vpop.eup %3164  ;;  %v1559_v23 = vmul.f32 %v3163_v16, %v4215_v31  ;;  %v2497_v31 = vsel %vm1817_vm5, 1.0, %v3285_v33  ;;  %v4984_v16 = vld [vmem:[#allocation59_spill] sm:$0xff] }
 0x3fe   : > { %3176 = vlog2.f32 %v1487_v62  ;;  %v1654_v20 = vsub.f32 %v4974_v11, %v1607_v35  ;;  %v1558_v32 = vmul.f32 %v3165_v53, %v4217_v5  ;;  %v4983_v35 = vld [vmem:[#allocation18_spill] sm:$0xff]  ;;  %vm2215_vm5 = vcmp.eq.s32.totalorder %v3669_v37, 0 }
 0x3ff   : > { %2052 = vadd.xlane.f32.xlu1 %v2005_v21  ;;  %v1911_v9 = vmul.f32 %v2495_v10, %v1655_v49  ;;  %3178 = vrcp.f32 %v1489_v42  ;;  %v2007_v26 = vmul.f32 %v1655_v49, %v1559_v23  ;;  %vm1821_vm9 = vcmp.eq.s32.totalorder %v3669_v37, %v4983_v35  ;;  %v4996_v35 = vld [vmem:[#allocation68_spill] sm:$0xff] }
 0x400   : > { %v1910_v14 = vmul.f32 %v2494_v38, %v1654_v20  ;;  %3180 = vrcp.f32 %v1487_v62  ;;  %v2006_v8 = vmul.f32 %v1654_v20, %v1558_v32 }
 0x401   : > { %2050 = vadd.xlane.f32.xlu0 %v2004_v40 }
 0x402   : > { %v3167_v24 = vpop.eup %3166 }
 0x403   : > { %v1613_v44 = vmul.f32 0.6931472, %v3167_v24  ;;  %1960 = vadd.xlane.f32.xlu1 %v1911_v9  ;;  %v3169_v25 = vpop.eup %3168  ;;  %v4985_v24 = vld [vmem:[#allocation17_spill] sm:$0xff] }
 0x404   : > { %v1493_v63 = vpop.xlane.xlu1 %1492  ;;  %v1611_v15 = vmul.f32 0.6931472, %v3169_v25  ;;  %v3171_v52 = vpop.eup %3170  ;;  %vm1820_vm10 = vcmp.eq.s32.totalorder %v3669_v37, %v4985_v24  ;;  %v4999_v24 = vld [vmem:[#allocation80_spill] sm:$0xff] }
 0x405   : > { %v1491_v61 = vpop.xlane.xlu0 %1490  ;;  %3182 = vlog2.f32 %v1493_v63  ;;  %1958 = vadd.xlane.f32.xlu0 %v1910_v14  ;;  %v1657_v13 = vsub.f32 %v4976_v34, %v1613_v44  ;;  %v3173_v28 = vpop.eup %3172  ;;  %v1561_v50 = vmul.f32 %v3171_v52, %v4233_v41  ;;  %v2499_v41 = vsel %vm1819_vm7, 1.0, %v3285_v33  ;;  %v4986_v44 = vld [vmem:[#allocation60_spill] sm:$0xff]  ;;  %v4989_v52 = vld [vmem:[#allocation19_spill] sm:$0xff] }
 0x406   : > { %3184 = vlog2.f32 %v1491_v61  ;;  %v1656_v5 = vsub.f32 %v4978_v27, %v1611_v15  ;;  %v1560_v51 = vmul.f32 %v3173_v28, %v4235_v30  ;;  %v2500_v25 = vsel %vm1820_vm10, 1.0, %v3285_v33  ;;  %v4988_v27 = vld [vmem:[#allocation63_spill] sm:$0xff] }
 0x407   : > { %2056 = vadd.xlane.f32.xlu1 %v2007_v26  ;;  %v1913_v48 = vmul.f32 %v2497_v31, %v1657_v13  ;;  %3186 = vrcp.f32 %v1493_v63  ;;  %v2009_v29 = vmul.f32 %v1657_v13, %v1561_v50  ;;  %vm1822_vm12 = vcmp.eq.s32.totalorder %v3669_v37, %v4989_v52 }
 0x408   : > { %v1912_v55 = vmul.f32 %v2496_v1, %v1656_v5  ;;  %3188 = vrcp.f32 %v1491_v61  ;;  %v2008_v42 = vmul.f32 %v1656_v5, %v1560_v51  ;;  %v4987_v61 = vld [vmem:[#allocation20_spill] sm:$0xff]  ;;  %v2502_v50 = vsel %vm1822_vm12, 1.0, %v3285_v33  ;;  %v4992_v51 = vld [vmem:[#allocation73_spill] sm:$0xff] }
 0x409   : > { %2054 = vadd.xlane.f32.xlu0 %v2006_v8  ;;  %vm1823_vm11 = vcmp.eq.s32.totalorder %v3669_v37, %v4987_v61  ;;  %v4990_v1 = vld [vmem:[#allocation64_spill] sm:$0xff] }
 0x40a   : > { %v3175_v6 = vpop.eup %3174  ;;  %v5002_v61 = vld [vmem:[#allocation72_spill] sm:$0xff] }
 0x40b   : > { %v1617_v19 = vmul.f32 0.6931472, %v3175_v6  ;;  %1964 = vadd.xlane.f32.xlu1 %v1913_v48  ;;  %v3177_v54 = vpop.eup %3176 }
 0x40c   : > { %v1497_v18 = vpop.xlane.xlu1 %1496  ;;  %v1615_v12 = vmul.f32 0.6931472, %v3177_v54  ;;  %v3179_v56 = vpop.eup %3178 }
 0x40d   : > { %v1495_v3 = vpop.xlane.xlu0 %1494  ;;  %3190 = vlog2.f32 %v1497_v18  ;;  %1962 = vadd.xlane.f32.xlu0 %v1912_v55  ;;  %v1659_v7 = vsub.f32 %v4980_v17, %v1617_v19  ;;  %v3181_v0 = vpop.eup %3180  ;;  %v1563_v49 = vmul.f32 %v3179_v56, %v4251_v22  ;;  %v2501_v22 = vsel %vm1821_vm9, 1.0, %v3285_v33  ;;  %v4991_v55 = vld [vmem:[#allocation22_spill] sm:$0xff]  ;;  %v4995_v56 = vld [vmem:[#allocation21_spill] sm:$0xff] }
 0x40e   : > { %3192 = vlog2.f32 %v1495_v3  ;;  %v1658_v30 = vsub.f32 %v4982_v4, %v1615_v12  ;;  %v1562_v40 = vmul.f32 %v3181_v0, %v4253_v45  ;;  %vm1825_vm13 = vcmp.eq.s32.totalorder %v3669_v37, %v4991_v55  ;;  %v4994_v4 = vld [vmem:[#allocation67_spill] sm:$0xff]  ;;  %v5008_v55 = vld [vmem:[#allocation78_spill] sm:$0xff] }
 0x40f   : > { %2060 = vadd.xlane.f32.xlu1 %v2009_v29  ;;  %v1915_v57 = vmul.f32 %v2499_v41, %v1659_v7  ;;  %3194 = vrcp.f32 %v1497_v18  ;;  %v2011_v20 = vmul.f32 %v1659_v7, %v1563_v49  ;;  %vm1824_vm14 = vcmp.eq.s32.totalorder %v3669_v37, %v4995_v56 }
 0x410   : > { %v1914_v39 = vmul.f32 %v2498_v59, %v1658_v30  ;;  %3196 = vrcp.f32 %v1495_v3  ;;  %v2010_v2 = vmul.f32 %v1658_v30, %v1562_v40  ;;  %v2505_v0 = vsel %vm1825_vm13, 1.0, %v3285_v33 }
 0x411   : > { %2058 = vadd.xlane.f32.xlu0 %v2008_v42 }
 0x412   : > { %v3183_v62 = vpop.eup %3182 }
 0x413   : > { %v1621_v21 = vmul.f32 0.6931472, %v3183_v62  ;;  %1968 = vadd.xlane.f32.xlu1 %v1915_v57  ;;  %v3185_v10 = vpop.eup %3184 }
 0x414   : > { %v1501_v36 = vpop.xlane.xlu1 %1500  ;;  %v1619_v11 = vmul.f32 0.6931472, %v3185_v10  ;;  %v3187_v63 = vpop.eup %3186  ;;  %v2504_v10 = vsel %vm1824_vm14, 1.0, %v3285_v33 }
 0x415   : > { %v1499_v9 = vpop.xlane.xlu0 %1498  ;;  %3198 = vlog2.f32 %v1501_v36  ;;  %1966 = vadd.xlane.f32.xlu0 %v1914_v39  ;;  %v1661_v53 = vsub.f32 %v4984_v16, %v1621_v21  ;;  %v3189_v23 = vpop.eup %3188  ;;  %v1565_v26 = vmul.f32 %v3187_v63, %v4269_v47  ;;  %v2503_v47 = vsel %vm1823_vm11, 1.0, %v3285_v33 }
 0x416   : > { %3200 = vlog2.f32 %v1499_v9  ;;  %v1660_v45 = vsub.f32 %v4986_v44, %v1619_v11  ;;  %v1564_v31 = vmul.f32 %v3189_v23, %v4271_v58  ;;  %v4998_v11 = vld [vmem:[#allocation79_spill] sm:$0xff] }
 0x417   : > { %2064 = vadd.xlane.f32.xlu1 %v2011_v20  ;;  %v1917_v38 = vmul.f32 %v2501_v22, %v1661_v53  ;;  %3202 = vrcp.f32 %v1501_v36  ;;  %v2013_v8 = vmul.f32 %v1661_v53, %v1565_v26  ;;  %v5000_v44 = vld [vmem:[#allocation71_spill] sm:$0xff] }
 0x418   : > { %v1916_v34 = vmul.f32 %v2500_v25, %v1660_v45  ;;  %3204 = vrcp.f32 %v1499_v9  ;;  %v2012_v6 = vmul.f32 %v1660_v45, %v1564_v31  ;;  %v4997_v9 = vld [vmem:[#allocation24_spill] sm:$0xff]  ;;  %v5001_v23 = vld [vmem:[#allocation23_spill] sm:$0xff] }
 0x419   : > { %2062 = vadd.xlane.f32.xlu0 %v2010_v2  ;;  %vm1827_vm15 = vcmp.eq.s32.totalorder %v3669_v37, %v4997_v9  ;;  %vm1826_vm0 = vcmp.eq.s32.totalorder %v3669_v37, %v5001_v23  ;;  %v5014_v9 = vld [vmem:[#allocation29_spill] sm:$0xff] }
 0x41a   : > { %v3191_v14 = vpop.eup %3190  ;;  %v2507_v63 = vsel %vm1827_vm15, 1.0, %v3285_v33 }
 0x41b   : > { %v1625_v32 = vmul.f32 0.6931472, %v3191_v14  ;;  %1972 = vadd.xlane.f32.xlu1 %v1917_v38  ;;  %v3193_v13 = vpop.eup %3192 }
 0x41c   : > { %v1505_v15 = vpop.xlane.xlu1 %1504  ;;  %v1623_v48 = vmul.f32 0.6931472, %v3193_v13  ;;  %v3195_v43 = vpop.eup %3194  ;;  %v2506_v13 = vsel %vm1826_vm0, 1.0, %v3285_v33 }
 0x41d   : > { %v1503_v46 = vpop.xlane.xlu0 %1502  ;;  %3206 = vlog2.f32 %v1505_v15  ;;  %1970 = vadd.xlane.f32.xlu0 %v1916_v34  ;;  %v1663_v5 = vsub.f32 %v4988_v27, %v1625_v32  ;;  %v3197_v19 = vpop.eup %3196  ;;  %v1567_v12 = vmul.f32 %v3195_v43, %v4992_v51 }
 0x41e   : > { %3208 = vlog2.f32 %v1503_v46  ;;  %v1662_v58 = vsub.f32 %v4990_v1, %v1623_v48  ;;  %v1566_v41 = vmul.f32 %v3197_v19, %v4993_v60  ;;  %v5004_v48 = vld [vmem:[#allocation81_spill] sm:$0xff]  ;;  %v5006_v1 = vld [vmem:[#allocation82_spill] sm:$0xff] }
 0x41f   : > { %2068 = vadd.xlane.f32.xlu1 %v2013_v8  ;;  %v1919_v28 = vmul.f32 %v2503_v47, %v1663_v5  ;;  %3210 = vrcp.f32 %v1505_v15  ;;  %v2015_v42 = vmul.f32 %v1663_v5, %v1567_v12  ;;  %v5007_v19 = vld [vmem:[#allocation25_spill] sm:$0xff] }
 0x420   : > { %v1918_v29 = vmul.f32 %v2502_v50, %v1662_v58  ;;  %3212 = vrcp.f32 %v1503_v46  ;;  %v2014_v59 = vmul.f32 %v1662_v58, %v1566_v41  ;;  %v5003_v46 = vld [vmem:[#allocation26_spill] sm:$0xff]  ;;  %vm1828_vm2 = vcmp.eq.s32.totalorder %v3669_v37, %v5007_v19  ;;  %v5010_v41 = vld [vmem:[#allocation84_spill] sm:$0xff] }
 0x421   : > { %2066 = vadd.xlane.f32.xlu0 %v2012_v6  ;;  %vm1829_vm1 = vcmp.eq.s32.totalorder %v3669_v37, %v5003_v46  ;;  %v2508_v12 = vsel %vm1828_vm2, 1.0, %v3285_v33 }
 0x422   : > { %v3199_v18 = vpop.eup %3198  ;;  %v2509_v43 = vsel %vm1829_vm1, 1.0, %v3285_v33 }
 0x423   : > { %v1629_v54 = vmul.f32 0.6931472, %v3199_v18  ;;  %1976 = vadd.xlane.f32.xlu1 %v1919_v28  ;;  %v3201_v17 = vpop.eup %3200  ;;  %v5005_v28 = vld [vmem:[#allocation77_spill] sm:$0xff] }
 0x424   : > { %v1509_v3 = vpop.xlane.xlu1 %1508  ;;  %v1627_v57 = vmul.f32 0.6931472, %v3201_v17  ;;  %v3203_v36 = vpop.eup %3202 }
 0x425   : > { %v1507_v7 = vpop.xlane.xlu0 %1506  ;;  %3214 = vlog2.f32 %v1509_v3  ;;  %1974 = vadd.xlane.f32.xlu0 %v1918_v29  ;;  %v1665_v30 = vsub.f32 %v4994_v4, %v1629_v54  ;;  %v3205_v49 = vpop.eup %3204  ;;  %v1569_v20 = vmul.f32 %v3203_v36, %v4998_v11  ;;  %v5009_v29 = vld [vmem:[#allocation83_spill] sm:$0xff]  ;;  %v5011_v4 = vld [vmem:[#allocation5_spill] sm:$0xff] }
 0x426   : > { %3216 = vlog2.f32 %v1507_v7  ;;  %v1664_v21 = vsub.f32 %v4996_v35, %v1627_v57  ;;  %v1568_v22 = vmul.f32 %v3205_v49, %v4999_v24 }
 0x427   : > { %2072 = vadd.xlane.f32.xlu1 %v2015_v42  ;;  %v1921_v62 = vmul.f32 %v2505_v0, %v1665_v30  ;;  %3218 = vrcp.f32 %v1509_v3  ;;  %v2017_v2 = vmul.f32 %v1665_v30, %v1569_v20  ;;  %v5012_v30 = vld [vmem:[#allocation6_spill] sm:$0xff] }
 0x428   : > { %v1920_v16 = vmul.f32 %v2504_v10, %v1664_v21  ;;  %3220 = vrcp.f32 %v1507_v7  ;;  %v2016_v25 = vmul.f32 %v1664_v21, %v1568_v22 }
 0x429   : > { %2070 = vadd.xlane.f32.xlu0 %v2014_v59  ;;  %v5013_v59 = vld [vmem:[#allocation27_spill] sm:$0xff] }
 0x42a   : > { %v3207_v39 = vpop.eup %3206 }
 0x42b   : > { %v1633_v40 = vmul.f32 0.6931472, %v3207_v39  ;;  %1980 = vadd.xlane.f32.xlu1 %v1921_v62  ;;  %v3209_v53 = vpop.eup %3208 }
 0x42c   : > { %v1631_v38 = vmul.f32 0.6931472, %v3209_v53  ;;  %v3211_v15 = vpop.eup %3210 }
 0x42d   : > { %1978 = vadd.xlane.f32.xlu0 %v1920_v16  ;;  %v1667_v45 = vsub.f32 %v5000_v44, %v1633_v40  ;;  %v3213_v26 = vpop.eup %3212  ;;  %v1571_v8 = vmul.f32 %v3211_v15, %v5004_v48  ;;  %v5015_v44 = vld [vmem:[#allocation28_spill] sm:$0xff]  ;;  %v5017_v48 = vld [vmem:[#allocation31_spill] sm:$0xff] }
 0x42e   : > { %v1666_v32 = vsub.f32 %v5002_v61, %v1631_v38  ;;  %v1570_v58 = vmul.f32 %v3213_v26, %v5006_v1 }
 0x42f   : > { %2076 = vadd.xlane.f32.xlu1 %v2017_v2  ;;  %v1923_v14 = vmul.f32 %v2507_v63, %v1667_v45  ;;  %v2019_v47 = vmul.f32 %v1667_v45, %v1571_v8 }
 0x430   : > { %v1922_v27 = vmul.f32 %v2506_v13, %v1666_v32  ;;  %v2018_v50 = vmul.f32 %v1666_v32, %v1570_v58 }
 0x431   : > { %2074 = vadd.xlane.f32.xlu0 %v2016_v25  ;;  %v5016_v25 = vld [vmem:[#allocation30_spill] sm:$0xff] }
 0x432   : > { %v3215_v34 = vpop.eup %3214 }
 0x433   : > { %v1637_v31 = vmul.f32 0.6931472, %v3215_v34  ;;  %1984 = vadd.xlane.f32.xlu1 %v1923_v14  ;;  %v3217_v5 = vpop.eup %3216 }
 0x434   : > { %v1635_v52 = vmul.f32 0.6931472, %v3217_v5  ;;  %v3219_v3 = vpop.eup %3218 }
 0x435   : > { %1982 = vadd.xlane.f32.xlu0 %v1922_v27  ;;  %v1669_v6 = vsub.f32 %v5005_v28, %v1637_v31  ;;  %v3221_v51 = vpop.eup %3220  ;;  %v1573_v17 = vmul.f32 %v3219_v3, %v5009_v29  ;;  %v5020_v29 = vld [vmem:[#allocation34_spill] sm:$0xff] }
 0x436   : > { %v1668_v54 = vsub.f32 %v5008_v55, %v1635_v52  ;;  %v1572_v57 = vmul.f32 %v3221_v51, %v5010_v41  ;;  %v5019_v55 = vld [vmem:[#allocation33_spill] sm:$0xff] }
 0x437   : > { %2080 = vadd.xlane.f32.xlu1 %v2019_v47  ;;  %v1925_v18 = vmul.f32 %v2509_v43, %v1669_v6  ;;  %v2021_v60 = vmul.f32 %v1669_v6, %v1573_v17  ;;  %v5018_v47 = vld [vmem:[#allocation32_spill] sm:$0xff] }
 0x438   : > { %v1924_v7 = vmul.f32 %v2508_v12, %v1668_v54  ;;  %v2020_v42 = vmul.f32 %v1668_v54, %v1572_v57 }
 0x439   : > { %2078 = vadd.xlane.f32.xlu0 %v2018_v50 }
 0x43b   : > { %1988 = vadd.xlane.f32.xlu1 %v1925_v18 }
 0x43d   : > { %1986 = vadd.xlane.f32.xlu0 %v1924_v7 }
 0x43f   : > { %2084 = vadd.xlane.f32.xlu1 %v2021_v60 }
 0x441   : > { %2082 = vadd.xlane.f32.xlu0 %v2020_v42 }
 0x443   : > { %2213 = vadd.xlane.f32.xlu1 %v5011_v4 }
 0x445   : > { %2211 = vadd.xlane.f32.xlu0 %v5012_v30 }
 0x44b   : > { %v2025_v33 = vpop.xlane.xlu1 %2024  ;;  %v1929_v56 = vpop.xlane.xlu0 %1928 }
 0x44c   : > { %v2087_v0 = vsub.f32 0.0, %v2025_v33  ;;  %v5021_v33 = vld [vmem:[#allocation35_spill] sm:$0xff] }
 0x44e   : > { %v2219_v62 = vsel %vm2217_vm3, %v2087_v0, 0.0 }
 0x44f   : > { %v2251_v35 = vsel %vm2216_vm4, %v5013_v59, %v2219_v62 }
 0x450   : > { %v2283_v21 = vsel %vm2215_vm5, %v1929_v56, %v2251_v35  ;;  %v1927_v36 = vpop.xlane.xlu1 %1926  ;;  %v2023_v49 = vpop.xlane.xlu0 %2022  ;;  %v5022_v35 = vld [vmem:[#allocation36_spill] sm:$0xff] }
 0x451   : > { %2315 = vst [vmem:[%s4536_s20 + $0x8] sm:$0xff] %v2283_v21  ;;  %v2086_v39 = vsub.f32 0.0, %v2023_v49 }
 0x453   : > { %v2218_v10 = vsel %vm2217_vm3, %v2086_v39, 0.0 }
 0x454   : > { %v2250_v40 = vsel %vm2216_vm4, %v5014_v9, %v2218_v10  ;;  %v1933_v11 = vpop.xlane.xlu1 %1932 }
 0x455   : > { %v2282_v20 = vsel %vm2215_vm5, %v1927_v36, %v2250_v40 }
 0x456   : > { %2314 = vst [vmem:[%s4536_s20] sm:$0xff] %v2282_v20  ;;  %v1931_v16 = vpop.xlane.xlu0 %1930  ;;  %v5023_v20 = vld [vmem:[#allocation37_spill] sm:$0xff] }
 0x458   : > { %v2029_v53 = vpop.xlane.xlu1 %2028 }
 0x459   : > { %v2089_v24 = vsub.f32 0.0, %v2029_v53 }
 0x45a   : > { %v2027_v22 = vpop.xlane.xlu0 %2026 }
 0x45b   : > { %v2221_v38 = vsel %vm2217_vm3, %v2089_v24, 0.0  ;;  %v2088_v2 = vsub.f32 0.0, %v2027_v22 }
 0x45c   : > { %v2253_v45 = vsel %vm2216_vm4, %v5015_v44, %v2221_v38  ;;  %v1937_v63 = vpop.xlane.xlu1 %1936  ;;  %v5024_v38 = vld [vmem:[#allocation38_spill] sm:$0xff] }
 0x45d   : > { %v2285_v23 = vsel %vm2215_vm5, %v1933_v11, %v2253_v45  ;;  %v2220_v14 = vsel %vm2217_vm3, %v2088_v2, 0.0 }
 0x45e   : > { %2317 = vst [vmem:[%s4536_s20 + $0x18] sm:$0xff] %v2285_v23  ;;  %v2252_v61 = vsel %vm2216_vm4, %v5016_v25, %v2220_v14  ;;  %v1935_v32 = vpop.xlane.xlu0 %1934 }
 0x45f   : > { %v2284_v15 = vsel %vm2215_vm5, %v1931_v16, %v2252_v61 }
 0x460   : > { %2316 = vst [vmem:[%s4536_s20 + $0x10] sm:$0xff] %v2284_v15  ;;  %v2033_v26 = vpop.xlane.xlu1 %2032 }
 0x461   : > { %v2091_v34 = vsub.f32 0.0, %v2033_v26 }
 0x462   : > { %v2031_v13 = vpop.xlane.xlu0 %2030 }
 0x463   : > { %v2223_v46 = vsel %vm2217_vm3, %v2091_v34, 0.0  ;;  %v2090_v31 = vsub.f32 0.0, %v2031_v13 }
 0x464   : > { %v2255_v8 = vsel %vm2216_vm4, %v5017_v48, %v2223_v46  ;;  %v1941_v27 = vpop.xlane.xlu1 %1940  ;;  %v5026_v46 = vld [vmem:[#allocation42_spill] sm:$0xff] }
 0x465   : > { %v2287_v5 = vsel %vm2215_vm5, %v1937_v63, %v2255_v8  ;;  %v2222_v52 = vsel %vm2217_vm3, %v2090_v31, 0.0 }
 0x466   : > { %2319 = vst [vmem:[%s4536_s20 + $0x28] sm:$0xff] %v2287_v5  ;;  %v2254_v28 = vsel %vm2216_vm4, %v5018_v47, %v2222_v52  ;;  %v1939_v6 = vpop.xlane.xlu0 %1938 }
 0x467   : > { %v2286_v1 = vsel %vm2215_vm5, %v1935_v32, %v2254_v28  ;;  %v5025_v32 = vld [vmem:[#allocation41_spill] sm:$0xff] }
 0x468   : > { %2318 = vst [vmem:[%s4536_s20 + $0x20] sm:$0xff] %v2286_v1  ;;  %v2037_v58 = vpop.xlane.xlu1 %2036 }
 0x469   : > { %v2093_v43 = vsub.f32 0.0, %v2037_v58 }
 0x46a   : > { %v2035_v19 = vpop.xlane.xlu0 %2034 }
 0x46b   : > { %v2225_v18 = vsel %vm2217_vm3, %v2093_v43, 0.0  ;;  %v2092_v50 = vsub.f32 0.0, %v2035_v19 }
 0x46c   : > { %v2257_v54 = vsel %vm2216_vm4, %v5019_v55, %v2225_v18  ;;  %v1945_v3 = vpop.xlane.xlu1 %1944  ;;  %v5028_v18 = vld [vmem:[#allocation46_spill] sm:$0xff] }
 0x46d   : > { %v2289_v51 = vsel %vm2215_vm5, %v1941_v27, %v2257_v54  ;;  %v2224_v12 = vsel %vm2217_vm3, %v2092_v50, 0.0 }
 0x46e   : > { %2321 = vst [vmem:[%s4536_s20 + $0x38] sm:$0xff] %v2289_v51  ;;  %v2256_v17 = vsel %vm2216_vm4, %v5020_v29, %v2224_v12  ;;  %v1943_v7 = vpop.xlane.xlu0 %1942 }
 0x46f   : > { %v2288_v60 = vsel %vm2215_vm5, %v1939_v6, %v2256_v17  ;;  %v5027_v6 = vld [vmem:[#allocation45_spill] sm:$0xff] }
 0x470   : > { %2320 = vst [vmem:[%s4536_s20 + $0x30] sm:$0xff] %v2288_v60  ;;  %v2041_v41 = vpop.xlane.xlu1 %2040 }
 0x471   : > { %v2095_v57 = vsub.f32 0.0, %v2041_v41 }
 0x472   : > { %v2039_v42 = vpop.xlane.xlu0 %2038 }
 0x473   : > { %v2227_v4 = vsel %vm2217_vm3, %v2095_v57, 0.0  ;;  %v2094_v30 = vsub.f32 0.0, %v2039_v42 }
 0x474   : > { %v2259_v56 = vsel %vm2216_vm4, %v5021_v33, %v2227_v4  ;;  %v1949_v0 = vpop.xlane.xlu1 %1948  ;;  %v5030_v4 = vld [vmem:[#allocation50_spill] sm:$0xff] }
 0x475   : > { %v2291_v62 = vsel %vm2215_vm5, %v1945_v3, %v2259_v56  ;;  %v2226_v59 = vsel %vm2217_vm3, %v2094_v30, 0.0 }
 0x476   : > { %2323 = vst [vmem:[%s4536_s20 + $0x48] sm:$0xff] %v2291_v62  ;;  %v2258_v21 = vsel %vm2216_vm4, %v5022_v35, %v2226_v59  ;;  %v1947_v36 = vpop.xlane.xlu0 %1946 }
 0x477   : > { %v2290_v49 = vsel %vm2215_vm5, %v1943_v7, %v2258_v21  ;;  %v5029_v7 = vld [vmem:[#allocation49_spill] sm:$0xff] }
 0x478   : > { %2322 = vst [vmem:[%s4536_s20 + $0x40] sm:$0xff] %v2290_v49  ;;  %v2045_v39 = vpop.xlane.xlu1 %2044 }
 0x479   : > { %v2097_v10 = vsub.f32 0.0, %v2045_v39 }
 0x47a   : > { %v2043_v9 = vpop.xlane.xlu0 %2042 }
 0x47b   : > { %v2229_v40 = vsel %vm2217_vm3, %v2097_v10, 0.0  ;;  %v2096_v11 = vsub.f32 0.0, %v2043_v9 }
 0x47c   : > { %v2261_v16 = vsel %vm2216_vm4, %v5023_v20, %v2229_v40  ;;  %v1953_v53 = vpop.xlane.xlu1 %1952  ;;  %v5032_v40 = vld [vmem:[#allocation54_spill] sm:$0xff] }
 0x47d   : > { %v2293_v24 = vsel %vm2215_vm5, %v1949_v0, %v2261_v16  ;;  %v2228_v22 = vsel %vm2217_vm3, %v2096_v11, 0.0 }
 0x47e   : > { %2325 = vst [vmem:[%s4536_s20 + $0x58] sm:$0xff] %v2293_v24  ;;  %v2260_v2 = vsel %vm2216_vm4, %v5024_v38, %v2228_v22  ;;  %v1951_v44 = vpop.xlane.xlu0 %1950 }
 0x47f   : > { %v2292_v45 = vsel %vm2215_vm5, %v1947_v36, %v2260_v2  ;;  %v5031_v36 = vld [vmem:[#allocation53_spill] sm:$0xff] }
 0x480   : > { %2324 = vst [vmem:[%s4536_s20 + $0x50] sm:$0xff] %v2292_v45  ;;  %v2049_v63 = vpop.xlane.xlu1 %2048 }
 0x481   : > { %v2099_v23 = vsub.f32 0.0, %v2049_v63 }
 0x482   : > { %v2047_v14 = vpop.xlane.xlu0 %2046 }
 0x483   : > { %v2231_v25 = vsel %vm2217_vm3, %v2099_v23, 0.0  ;;  %v2098_v61 = vsub.f32 0.0, %v2047_v14 }
 0x484   : > { %v2263_v15 = vsel %vm2216_vm4, %v5025_v32, %v2231_v25  ;;  %v1957_v26 = vpop.xlane.xlu1 %1956  ;;  %v5034_v25 = vld [vmem:[#allocation58_spill] sm:$0xff] }
 0x485   : > { %v2295_v34 = vsel %vm2215_vm5, %v1953_v53, %v2263_v15  ;;  %v2230_v13 = vsel %vm2217_vm3, %v2098_v61, 0.0 }
 0x486   : > { %2327 = vst [vmem:[%s4536_s20 + $0x68] sm:$0xff] %v2295_v34  ;;  %v2262_v31 = vsel %vm2216_vm4, %v5026_v46, %v2230_v13  ;;  %v1955_v48 = vpop.xlane.xlu0 %1954 }
 0x487   : > { %v2294_v8 = vsel %vm2215_vm5, %v1951_v44, %v2262_v31  ;;  %v5033_v44 = vld [vmem:[#allocation57_spill] sm:$0xff] }
 0x488   : > { %2326 = vst [vmem:[%s4536_s20 + $0x60] sm:$0xff] %v2294_v8  ;;  %v2053_v27 = vpop.xlane.xlu1 %2052 }
 0x489   : > { %v2101_v5 = vsub.f32 0.0, %v2053_v27 }
 0x48a   : > { %v2051_v52 = vpop.xlane.xlu0 %2050 }
 0x48b   : > { %v2233_v47 = vsel %vm2217_vm3, %v2101_v5, 0.0  ;;  %v2100_v28 = vsub.f32 0.0, %v2051_v52 }
 0x48c   : > { %v2265_v1 = vsel %vm2216_vm4, %v5027_v6, %v2233_v47  ;;  %v1961_v58 = vpop.xlane.xlu1 %1960  ;;  %v5036_v47 = vld [vmem:[#allocation62_spill] sm:$0xff] }
 0x48d   : > { %v2297_v43 = vsel %vm2215_vm5, %v1957_v26, %v2265_v1  ;;  %v2232_v19 = vsel %vm2217_vm3, %v2100_v28, 0.0 }
 0x48e   : > { %2329 = vst [vmem:[%s4536_s20 + $0x78] sm:$0xff] %v2297_v43  ;;  %v2264_v50 = vsel %vm2216_vm4, %v5028_v18, %v2232_v19  ;;  %v1959_v55 = vpop.xlane.xlu0 %1958 }
 0x48f   : > { %v2296_v54 = vsel %vm2215_vm5, %v1955_v48, %v2264_v50  ;;  %v5035_v48 = vld [vmem:[#allocation61_spill] sm:$0xff] }
 0x490   : > { %2328 = vst [vmem:[%s4536_s20 + $0x70] sm:$0xff] %v2296_v54  ;;  %v2057_v3 = vpop.xlane.xlu1 %2056 }
 0x491   : > { %v2103_v51 = vsub.f32 0.0, %v2057_v3 }
 0x492   : > { %v2055_v12 = vpop.xlane.xlu0 %2054 }
 0x493   : > { %v2235_v29 = vsel %vm2217_vm3, %v2103_v51, 0.0  ;;  %v2102_v17 = vsub.f32 0.0, %v2055_v12 }
 0x494   : > { %v2267_v60 = vsel %vm2216_vm4, %v5029_v7, %v2235_v29  ;;  %v1965_v41 = vpop.xlane.xlu1 %1964  ;;  %v5038_v29 = vld [vmem:[#allocation66_spill] sm:$0xff] }
 0x495   : > { %v2299_v57 = vsel %vm2215_vm5, %v1961_v58, %v2267_v60  ;;  %v2234_v42 = vsel %vm2217_vm3, %v2102_v17, 0.0 }
 0x496   : > { %2331 = vst [vmem:[%s4536_s20 + $0x88] sm:$0xff] %v2299_v57  ;;  %v2266_v30 = vsel %vm2216_vm4, %v5030_v4, %v2234_v42  ;;  %v1963_v33 = vpop.xlane.xlu0 %1962 }
 0x497   : > { %v2298_v56 = vsel %vm2215_vm5, %v1959_v55, %v2266_v30  ;;  %v5037_v55 = vld [vmem:[#allocation65_spill] sm:$0xff] }
 0x498   : > { %2330 = vst [vmem:[%s4536_s20 + $0x80] sm:$0xff] %v2298_v56  ;;  %v2061_v0 = vpop.xlane.xlu1 %2060 }
 0x499   : > { %v2105_v62 = vsub.f32 0.0, %v2061_v0 }
 0x49a   : > { %v2059_v59 = vpop.xlane.xlu0 %2058 }
 0x49b   : > { %v2237_v35 = vsel %vm2217_vm3, %v2105_v62, 0.0  ;;  %v2104_v21 = vsub.f32 0.0, %v2059_v59 }
 0x49c   : > { %v2269_v49 = vsel %vm2216_vm4, %v5031_v36, %v2237_v35  ;;  %v1969_v39 = vpop.xlane.xlu1 %1968  ;;  %v5040_v35 = vld [vmem:[#allocation70_spill] sm:$0xff] }
 0x49d   : > { %v2301_v10 = vsel %vm2215_vm5, %v1965_v41, %v2269_v49  ;;  %v2236_v9 = vsel %vm2217_vm3, %v2104_v21, 0.0 }
 0x49e   : > { %2333 = vst [vmem:[%s4536_s20 + $0x98] sm:$0xff] %v2301_v10  ;;  %v2268_v11 = vsel %vm2216_vm4, %v5032_v40, %v2236_v9  ;;  %v1967_v20 = vpop.xlane.xlu0 %1966 }
 0x49f   : > { %v2300_v16 = vsel %vm2215_vm5, %v1963_v33, %v2268_v11  ;;  %v5039_v33 = vld [vmem:[#allocation69_spill] sm:$0xff] }
 0x4a0   : > { %2332 = vst [vmem:[%s4536_s20 + $0x90] sm:$0xff] %v2300_v16  ;;  %v2065_v53 = vpop.xlane.xlu1 %2064 }
 0x4a1   : > { %v2107_v24 = vsub.f32 0.0, %v2065_v53 }
 0x4a2   : > { %v2063_v22 = vpop.xlane.xlu0 %2062 }
 0x4a3   : > { %v2239_v38 = vsel %vm2217_vm3, %v2107_v24, 0.0  ;;  %v2106_v2 = vsub.f32 0.0, %v2063_v22 }
 0x4a4   : > { %v2271_v45 = vsel %vm2216_vm4, %v5033_v44, %v2239_v38  ;;  %v1973_v63 = vpop.xlane.xlu1 %1972  ;;  %v5042_v38 = vld [vmem:[#allocation76_spill] sm:$0xff] }
 0x4a5   : > { %v2303_v23 = vsel %vm2215_vm5, %v1969_v39, %v2271_v45  ;;  %v2238_v14 = vsel %vm2217_vm3, %v2106_v2, 0.0 }
 0x4a6   : > { %2335 = vst [vmem:[%s4536_s20 + $0xa8] sm:$0xff] %v2303_v23  ;;  %v2270_v61 = vsel %vm2216_vm4, %v5034_v25, %v2238_v14  ;;  %v1971_v32 = vpop.xlane.xlu0 %1970 }
 0x4a7   : > { %v2302_v15 = vsel %vm2215_vm5, %v1967_v20, %v2270_v61  ;;  %v5041_v20 = vld [vmem:[#allocation75_spill] sm:$0xff] }
 0x4a8   : > { %2334 = vst [vmem:[%s4536_s20 + $0xa0] sm:$0xff] %v2302_v15  ;;  %v2069_v26 = vpop.xlane.xlu1 %2068 }
 0x4a9   : > { %v2109_v34 = vsub.f32 0.0, %v2069_v26 }
 0x4aa   : > { %v2067_v13 = vpop.xlane.xlu0 %2066 }
 0x4ab   : > { %v2241_v46 = vsel %vm2217_vm3, %v2109_v34, 0.0  ;;  %v2108_v31 = vsub.f32 0.0, %v2067_v13 }
 0x4ac   : > { %v2273_v8 = vsel %vm2216_vm4, %v5035_v48, %v2241_v46  ;;  %v1977_v27 = vpop.xlane.xlu1 %1976 }
 0x4ad   : > { %v2305_v5 = vsel %vm2215_vm5, %v1973_v63, %v2273_v8  ;;  %v2240_v52 = vsel %vm2217_vm3, %v2108_v31, 0.0 }
 0x4ae   : > { %2337 = vst [vmem:[%s4536_s20 + $0xb8] sm:$0xff] %v2305_v5  ;;  %v2272_v28 = vsel %vm2216_vm4, %v5036_v47, %v2240_v52  ;;  %v1975_v6 = vpop.xlane.xlu0 %1974 }
 0x4af   : > { %v2304_v1 = vsel %vm2215_vm5, %v1971_v32, %v2272_v28 }
 0x4b0   : > { %2336 = vst [vmem:[%s4536_s20 + $0xb0] sm:$0xff] %v2304_v1  ;;  %v2073_v58 = vpop.xlane.xlu1 %2072 }
 0x4b1   : > { %v2111_v43 = vsub.f32 0.0, %v2073_v58 }
 0x4b2   : > { %v2071_v19 = vpop.xlane.xlu0 %2070 }
 0x4b3   : > { %v2243_v18 = vsel %vm2217_vm3, %v2111_v43, 0.0  ;;  %v2110_v50 = vsub.f32 0.0, %v2071_v19 }
 0x4b4   : > { %v2275_v54 = vsel %vm2216_vm4, %v5037_v55, %v2243_v18  ;;  %v1981_v3 = vpop.xlane.xlu1 %1980 }
 0x4b5   : > { %v2307_v51 = vsel %vm2215_vm5, %v1977_v27, %v2275_v54  ;;  %v2242_v12 = vsel %vm2217_vm3, %v2110_v50, 0.0 }
 0x4b6   : > { %2339 = vst [vmem:[%s4536_s20 + $0xc8] sm:$0xff] %v2307_v51  ;;  %v2274_v17 = vsel %vm2216_vm4, %v5038_v29, %v2242_v12  ;;  %v1979_v7 = vpop.xlane.xlu0 %1978 }
 0x4b7   : > { %v2306_v60 = vsel %vm2215_vm5, %v1975_v6, %v2274_v17 }
 0x4b8   : > { %2338 = vst [vmem:[%s4536_s20 + $0xc0] sm:$0xff] %v2306_v60  ;;  %v2077_v41 = vpop.xlane.xlu1 %2076 }
 0x4b9   : > { %v2113_v57 = vsub.f32 0.0, %v2077_v41 }
 0x4ba   : > { %v2075_v42 = vpop.xlane.xlu0 %2074 }
 0x4bb   : > { %v2245_v4 = vsel %vm2217_vm3, %v2113_v57, 0.0  ;;  %v2112_v30 = vsub.f32 0.0, %v2075_v42 }
 0x4bc   : > { %v2277_v56 = vsel %vm2216_vm4, %v5039_v33, %v2245_v4  ;;  %v1985_v0 = vpop.xlane.xlu1 %1984 }
 0x4bd   : > { %v2309_v62 = vsel %vm2215_vm5, %v1981_v3, %v2277_v56  ;;  %v2244_v59 = vsel %vm2217_vm3, %v2112_v30, 0.0 }
 0x4be   : > { %2341 = vst [vmem:[%s4536_s20 + $0xd8] sm:$0xff] %v2309_v62  ;;  %v2276_v21 = vsel %vm2216_vm4, %v5040_v35, %v2244_v59  ;;  %v1983_v36 = vpop.xlane.xlu0 %1982 }
 0x4bf   : > { %v2308_v49 = vsel %vm2215_vm5, %v1979_v7, %v2276_v21 }
 0x4c0   : > { %2340 = vst [vmem:[%s4536_s20 + $0xd0] sm:$0xff] %v2308_v49  ;;  %v2081_v39 = vpop.xlane.xlu1 %2080 }
 0x4c1   : > { %v2115_v10 = vsub.f32 0.0, %v2081_v39 }
 0x4c2   : > { %v2079_v9 = vpop.xlane.xlu0 %2078 }
 0x4c3   : > { %v2247_v40 = vsel %vm2217_vm3, %v2115_v10, 0.0  ;;  %v2114_v11 = vsub.f32 0.0, %v2079_v9 }
 0x4c4   : > { %v2279_v16 = vsel %vm2216_vm4, %v5041_v20, %v2247_v40  ;;  %v1989_v53 = vpop.xlane.xlu1 %1988 }
 0x4c5   : > { %v2311_v24 = vsel %vm2215_vm5, %v1985_v0, %v2279_v16  ;;  %v2246_v22 = vsel %vm2217_vm3, %v2114_v11, 0.0 }
 0x4c6   : > { %2343 = vst [vmem:[%s4536_s20 + $0xe8] sm:$0xff] %v2311_v24  ;;  %v2278_v2 = vsel %vm2216_vm4, %v5042_v38, %v2246_v22  ;;  %v1987_v44 = vpop.xlane.xlu0 %1986 }
 0x4c7   : > { %v2310_v45 = vsel %vm2215_vm5, %v1983_v36, %v2278_v2 }
 0x4c8   : > { %2342 = vst [vmem:[%s4536_s20 + $0xe0] sm:$0xff] %v2310_v45  ;;  %v2085_v63 = vpop.xlane.xlu1 %2084 }
 0x4c9   : > { %v2117_v23 = vsub.f32 0.0, %v2085_v63 }
 0x4ca   : > { %v2083_v14 = vpop.xlane.xlu0 %2082 }
 0x4cb   : > { %v2249_v25 = vsel %vm2217_vm3, %v2117_v23, 0.0  ;;  %v2116_v61 = vsub.f32 0.0, %v2083_v14 }
 0x4cc   : > { %v2214_v32 = vpop.xlane.xlu1 %2213 }
 0x4cd   : > { %v2281_v15 = vsel %vm2216_vm4, %v2214_v32, %v2249_v25  ;;  %v2248_v26 = vsel %vm2217_vm3, %v2116_v61, 0.0 }
 0x4ce   : > { %v2313_v34 = vsel %vm2215_vm5, %v1989_v53, %v2281_v15  ;;  %v2212_v13 = vpop.xlane.xlu0 %2211 }
 0x4cf   : > { %2345 = vst [vmem:[%s4536_s20 + $0xf8] sm:$0xff] %v2313_v34  ;;  %v2280_v46 = vsel %vm2216_vm4, %v2212_v13, %v2248_v26 }
 0x4d0   : > { %v2312_v31 = vsel %vm2215_vm5, %v1987_v44, %v2280_v46 }
 0x4d1   : > { %2344 = vst [vmem:[%s4536_s20 + $0xf0] sm:$0xff] %v2312_v31 }
 0x4d2   : > { %3235 = shalt.err (!%p3232_p3)
}
 0x4d3   : > { %s3236_s13 = scalar_lea.hbm %s4784_s26, 4096  ;;  %s3240_s20 = scalar_lea.hbm %s4844_s8, 8192 }
 0x4d4   : > { %p3237_p4 = scmp.ne.s32.totalorder %s4784_s26, %s3236_s13  ;;  %p3241_p9 = scmp.lt.s32.totalorder %s4784_s26, %s4844_s8 }
 0x4d5   : > { %p3242_p10 = scmp.lt.s32.totalorder %s3240_s20, %s3236_s13 }
 0x4d6   : > { %p3238_p7 = pnand %p3237_p4, %p3372_p5 }
 0x4d7   : > { %p3243_p11 = por %p3242_p10, %p3241_p9 }
 0x4d8   : > { %p3239_p8 = pneg %p3238_p7 }
 0x4da   : > { %p3244_p12 = pnand %p3243_p11, %p3239_p8 }
 0x4dc   : > { %3247 = shalt.err (!%p3244_p12)
}
 0x4dd   : > { %s3287_s24 = smov 128   ;;  %s3288_s10 = smov 8  }
 0x4de   : > { %2857 = dma.vmem_to_hbm [thread:$0]  (%p3372_p5), %s4786_s25, 4096, %s4784_s26, %s4796_s9, %s3287_s24, %s3287_s24, %s3288_s10  }
 0x4df PF: > { %p2863_p13 = scmp.ge.s32.totalorder %s3282_s30, 2  ;;  %s2375_s19 = sand.u32 1, %s3270_s27  }
 0x4e0   : > { %s2376_s22 = scalar_lea.sflag [#allocation3], %s2375_s19 }
 0x4e1   : > { %p2860_p0 = pnand %p2863_p13, %p3376_p6 }
 0x4e3   : > { %p2861_p1 = pneg %p2860_p0 }
 0x4e5   : > { %3265 = dma.done.wait (%p2861_p1), %s2376_s22, 4096  }
 0x4e6   : > { %3267 = vsyncadd (%p2861_p1), %s2376_s22, 4294963200  ;;  %p18_p2 = scmp.ge.s32.totalorder %s3359_s11, 4   ;;  %s5043_s27 = smov %s3274_s28 }
 0x4e7   : > { %s5044_s28 = smov %s3278_s29  ;;  %s5045_s29 = smov %s3370_s14 }
 0x4e8   : > { %s5046_s30 = smov %s3359_s11  ;;  %20 = sbr.rel (!%p18_p2) target bundleno = 3 (0x3), region = 90 }
 0x4ed   :  { %2381 = vsyncpa [#allocation3], 1 }
 0x4ee   :  { %2383 = vsyncpa [#allocation3 + $0x1], 1 }

</bundles_post_ra>
